<compile_context>
chip_gen: v7x
topology: tpu7x:2x2x1
jax: 0.10.0
libtpu: 0.0.40
codegen_flags: <defaults>
</compile_context>

<pallas_src>
import functools
import math

import jax
import jax.numpy as jnp
from jax.experimental import pallas as pl
from jax.experimental.pallas import tpu as pltpu

# ------------------------- small config (consistent with the module) ------------
BATCH = 2
SEQ = 8
INPUT_DIMS = 16          # input_dims  (!= hidden_size -> input_up_proj is used)
HIDDEN = 32              # transformer encoder embed_dim (self.hidden_size)
HIDDEN_T = 8             # hidden_t_dim
TIME_EMBED = HIDDEN_T * 4
VOCAB = 50
VOCAB_PAD = 128          # lane-dense padding of the vocab axis (masked in-kernel)
N_LAYERS = 2             # scaled-down fairseq encoder (iwslt has 6)
N_HEADS = 4
HEAD_DIM = HIDDEN // N_HEADS
FFN = 64                 # encoder ffn dim (scaled down)
MAX_POS = 64             # max_source_positions (scaled down)
PAD_IDX = 1              # fairseq Dictionary.pad()
LN_EPS = 1e-5
EMBED_SCALE = math.sqrt(HIDDEN)   # no_scale_embedding=False for iwslt config
NEG_BIG = -1e30


# --------------------------------- fused Pallas kernel ---------------------------
def _fused_forward_kernel(
    x_ref, te_ref,
    tw1_ref, tb1_ref, tw2_ref, tb2_ref,
    uw1_ref, ub1_ref, uw2_ref, ub2_ref,
    pos_ref, olng_ref, olnb_ref,
    wet_ref, we_ref, lmw_ref, lmb_ref,
    qkvw_ref, qkvb_ref, ow_ref, ob_ref,
    l1g_ref, l1b_ref, f1w_ref, f1b_ref, f2w_ref, f2b_ref,
    l2g_ref, l2b_ref,
    out_ref,
):
    """One grid step == one batch element. All activations stay on-chip."""
    S = x_ref.shape[1]

    def dot(a, b):
        return jnp.dot(a, b, preferred_element_type=jnp.float32)

    def layer_norm(z, g, b):
        mu = jnp.mean(z, axis=-1, keepdims=True)
        zc = z - mu
        var = jnp.mean(zc * zc, axis=-1, keepdims=True)
        return zc * jax.lax.rsqrt(var + LN_EPS) * g + b

    x = x_ref[0]                                    # (S, C)
    te = te_ref[0]                                  # (1, Ht)

    # 1) time-embedding MLP: Linear -> SiLU -> Linear
    h = dot(te, tw1_ref[...]) + tb1_ref[...]
    h = h * jax.nn.sigmoid(h)
    emb_t = dot(h, tw2_ref[...]) + tb2_ref[...]     # (1, H)

    # 2) input up-projection: Linear -> Tanh -> Linear
    h = jnp.tanh(dot(x, uw1_ref[...]) + ub1_ref[...])
    emb_x = dot(h, uw2_ref[...]) + ub2_ref[...]     # (S, H)

    # 3) position + x + time, outer LayerNorm
    emb = layer_norm(emb_x + pos_ref[...] + emb_t, olng_ref[...], olnb_ref[...])

    # 4) guessed tokens (no_grad, logits_mode=1): argmax(x @ word_emb.T) -> pad mask
    logits = dot(x, wet_ref[...])                                   # (S, Vp)
    col = jax.lax.broadcasted_iota(jnp.int32, logits.shape, 1)
    valid = col < VOCAB
    logits = jnp.where(valid, logits, jnp.float32(NEG_BIG))
    mx = jnp.max(logits, axis=-1, keepdims=True)
    colf = col.astype(jnp.float32)
    # first-index-of-max == torch argmax tie-break
    amax = jnp.min(jnp.where(logits >= mx, colf, jnp.float32(VOCAB_PAD)),
                   axis=-1, keepdims=True)                          # (S, 1)
    pad_col = (amax == jnp.float32(PAD_IDX)).astype(jnp.float32)    # (S, 1)

    # key-padding additive bias built in-kernel (never written to HBM):
    # bias[q, k] = -1e30 * pad[k]  via outer(ones, pad)
    pad_keys = jax.lax.dot_general(
        jnp.ones((S, 1), jnp.float32), pad_col,
        (((1,), (1,)), ((), ())), preferred_element_type=jnp.float32)  # (S, S)
    key_bias = pad_keys * jnp.float32(NEG_BIG)

    # 5) fairseq TransformerEncoder, post-norm, relu FFN, all layers fused
    h2 = emb * jnp.float32(EMBED_SCALE)
    h2 = h2 * (1.0 - pad_col)                       # zero padded rows
    scale = jnp.float32(1.0 / math.sqrt(HEAD_DIM))
    for l in range(N_LAYERS):
        qkv = dot(h2, qkvw_ref[l]) + qkvb_ref[l]    # merged Q/K/V: (S, 3H)
        heads = []
        for hh in range(N_HEADS):
            q = qkv[:, hh * HEAD_DIM:(hh + 1) * HEAD_DIM] * scale
            k = qkv[:, HIDDEN + hh * HEAD_DIM:HIDDEN + (hh + 1) * HEAD_DIM]
            v = qkv[:, 2 * HIDDEN + hh * HEAD_DIM:2 * HIDDEN + (hh + 1) * HEAD_DIM]
            s = jax.lax.dot_general(q, k, (((1,), (1,)), ((), ())),
                                    preferred_element_type=jnp.float32)  # (S, S)
            s = s + key_bias
            m = jnp.max(s, axis=-1, keepdims=True)
            p = jnp.exp(s - m)
            p = p * pl.reciprocal(jnp.sum(p, axis=-1, keepdims=True), approx=True)
            heads.append(dot(p, v))                 # (S, HD)
        attn = jnp.concatenate(heads, axis=-1)      # (S, H)
        attn = dot(attn, ow_ref[l]) + ob_ref[l]
        h2 = layer_norm(h2 + attn, l1g_ref[l], l1b_ref[l])          # residual + LN fused
        f = jnp.maximum(dot(h2, f1w_ref[l]) + f1b_ref[l], 0.0)
        f = dot(f, f2w_ref[l]) + f2b_ref[l]
        h2 = layer_norm(h2 + f, l2g_ref[l], l2b_ref[l])
    # encoder_normalize_before=False -> no final encoder layer norm.

    # 6+7) lm_head (Linear + Softmax) fused with mean = probs @ word_emb
    lg = dot(h2, lmw_ref[...]) + lmb_ref[...]       # (S, Vp)
    lg = jnp.where(valid, lg, jnp.float32(NEG_BIG)) # exclude padded vocab slots
    m = jnp.max(lg, axis=-1, keepdims=True)
    e = jnp.exp(lg - m)
    pv = e * pl.reciprocal(jnp.sum(e, axis=-1, keepdims=True), approx=True)
    out_ref[0] = dot(pv, we_ref[...]).astype(out_ref.dtype)         # (S, C)


# ------------------------------------ glue ---------------------------------------
def timestep_embedding(timesteps, dim, max_period=10000):
    half = dim // 2
    freqs = jnp.exp(-math.log(max_period) *
                    jnp.arange(half, dtype=jnp.float32) / half)
    args = timesteps.astype(jnp.float32)[:, None] * freqs[None, :]
    emb = jnp.concatenate([jnp.cos(args), jnp.sin(args)], axis=-1)
    if dim % 2:
        emb = jnp.concatenate([emb, jnp.zeros_like(emb[:, :1])], axis=-1)
    return emb


def init_params(key):
    """Weights are pre-transposed to (in, out), vocab-padded, and layer-stacked."""
    def nrm(k, shape, std=0.02):
        return std * jax.random.normal(k, shape, dtype=jnp.float32)

    keys = iter(jax.random.split(key, 64))
    p = {}
    we = nrm(next(keys), (VOCAB, INPUT_DIMS))                       # nn.Embedding
    we_pad = jnp.zeros((VOCAB_PAD, INPUT_DIMS), jnp.float32).at[:VOCAB].set(we)
    p["word_emb"] = we_pad                                          # (Vp, C)
    p["word_emb_t"] = jnp.transpose(we_pad)                         # (C, Vp) once, at init
    p["pos_emb"] = nrm(next(keys), (MAX_POS, HIDDEN))
    # time_embed: Linear(t, 4t) -> SiLU -> Linear(4t, H)
    p["time_w1"] = nrm(next(keys), (HIDDEN_T, TIME_EMBED)); p["time_b1"] = jnp.zeros((1, TIME_EMBED), jnp.float32)
    p["time_w2"] = nrm(next(keys), (TIME_EMBED, HIDDEN));   p["time_b2"] = jnp.zeros((1, HIDDEN), jnp.float32)
    # input_up_proj: Linear(C, H) -> Tanh -> Linear(H, H)
    p["up_w1"] = nrm(next(keys), (INPUT_DIMS, HIDDEN));     p["up_b1"] = jnp.zeros((1, HIDDEN), jnp.float32)
    p["up_w2"] = nrm(next(keys), (HIDDEN, HIDDEN));         p["up_b2"] = jnp.zeros((1, HIDDEN), jnp.float32)
    # outer LayerNorm
    p["ln_g"] = jnp.ones((1, HIDDEN), jnp.float32); p["ln_b"] = jnp.zeros((1, HIDDEN), jnp.float32)
    # lm_head: Linear(H, V) (+ Softmax), padded on the vocab axis
    lm_w = nrm(next(keys), (HIDDEN, VOCAB))
    p["lm_w"] = jnp.zeros((HIDDEN, VOCAB_PAD), jnp.float32).at[:, :VOCAB].set(lm_w)
    p["lm_b"] = jnp.zeros((1, VOCAB_PAD), jnp.float32)
    # fairseq encoder layers (post-norm, relu FFN), stacked on a layer axis
    qkv_w, o_w, fc1_w, fc2_w = [], [], [], []
    for _ in range(N_LAYERS):
        qkv_w.append(nrm(next(keys), (HIDDEN, 3 * HIDDEN)))
        o_w.append(nrm(next(keys), (HIDDEN, HIDDEN)))
        fc1_w.append(nrm(next(keys), (HIDDEN, FFN)))
        fc2_w.append(nrm(next(keys), (FFN, HIDDEN)))
    p["qkv_w"] = jnp.stack(qkv_w)                                   # (L, H, 3H)
    p["qkv_b"] = jnp.zeros((N_LAYERS, 1, 3 * HIDDEN), jnp.float32)
    p["o_w"] = jnp.stack(o_w)
    p["o_b"] = jnp.zeros((N_LAYERS, 1, HIDDEN), jnp.float32)
    p["ln1_g"] = jnp.ones((N_LAYERS, 1, HIDDEN), jnp.float32)
    p["ln1_b"] = jnp.zeros((N_LAYERS, 1, HIDDEN), jnp.float32)
    p["fc1_w"] = jnp.stack(fc1_w)
    p["fc1_b"] = jnp.zeros((N_LAYERS, 1, FFN), jnp.float32)
    p["fc2_w"] = jnp.stack(fc2_w)
    p["fc2_b"] = jnp.zeros((N_LAYERS, 1, HIDDEN), jnp.float32)
    p["ln2_g"] = jnp.ones((N_LAYERS, 1, HIDDEN), jnp.float32)
    p["ln2_b"] = jnp.zeros((N_LAYERS, 1, HIDDEN), jnp.float32)
    return p


def _const_index_map(nd):
    def im(b):
        return (0,) * nd
    return im


def _rep_spec(a):
    # Full-array block with a constant block index: stays VMEM-resident across
    # grid iterations (no re-DMA between consecutive batch steps).
    return pl.BlockSpec(a.shape, _const_index_map(a.ndim))


def forward(params, x, timesteps):
    """Reproduces FairseqEncoderModel.forward (dropout=0, logits_mode=1,
    no_token_positional_embeddings=True, layernorm_embedding=False,
    encoder_normalize_before=False) with a single fused Pallas kernel."""
    B, S, C = x.shape
    xf = x.astype(jnp.float32)
    te = timestep_embedding(timesteps, HIDDEN_T).reshape(B, 1, HIDDEN_T)
    pos = params["pos_emb"][:S]                                     # (S, H)

    weight_args = (
        params["time_w1"], params["time_b1"], params["time_w2"], params["time_b2"],
        params["up_w1"], params["up_b1"], params["up_w2"], params["up_b2"],
        pos, params["ln_g"], params["ln_b"],
        params["word_emb_t"], params["word_emb"],
        params["lm_w"], params["lm_b"],
        params["qkv_w"], params["qkv_b"], params["o_w"], params["o_b"],
        params["ln1_g"], params["ln1_b"],
        params["fc1_w"], params["fc1_b"], params["fc2_w"], params["fc2_b"],
        params["ln2_g"], params["ln2_b"],
    )

    in_specs = [
        pl.BlockSpec((1, S, C), lambda b: (b, 0, 0)),               # x, per batch
        pl.BlockSpec((1, 1, HIDDEN_T), lambda b: (b, 0, 0)),        # time emb, per batch
    ] + [_rep_spec(a) for a in weight_args]

    out = pl.pallas_call(
        _fused_forward_kernel,
        out_shape=jax.ShapeDtypeStruct((B, S, C), jnp.float32),
        grid=(B,),
        in_specs=in_specs,
        out_specs=pl.BlockSpec((1, S, C), lambda b: (b, 0, 0)),
        compiler_params=pltpu.CompilerParams(
            dimension_semantics=("parallel",)),                     # 2 TCs on v7x
    )(xf, te, *weight_args)
    return out.astype(x.dtype)


# ------------------------------------ main ----------------------------------------
if __name__ == "__main__":
    key = jax.random.PRNGKey(0)
    pkey, xkey, tkey = jax.random.split(key, 3)
    params = init_params(pkey)
    x = jax.random.normal(xkey, (BATCH, SEQ, INPUT_DIMS), dtype=jnp.float32)
    timesteps = jax.random.randint(tkey, (BATCH,), 0, 1000)

    fwd = jax.jit(forward)
    out = jax.block_until_ready(fwd(params, x, timesteps))

    assert out.shape == (BATCH, SEQ, INPUT_DIMS), out.shape
    assert out.dtype == x.dtype, out.dtype
    assert bool(jnp.all(jnp.isfinite(out)))
    print("KERNEL_OK")
</pallas_src>

<mosaic_0001>
module attributes {stable_mosaic.version = 11 : i64} {
  func.func @_fused_forward_kernel(%arg0: i32, %arg1: memref<1x8x16xf32, #tpu.memory_space<vmem>>, %arg2: memref<1x1x8xf32, #tpu.memory_space<vmem>>, %arg3: memref<8x32xf32, #tpu.memory_space<vmem>>, %arg4: memref<1x32xf32, #tpu.memory_space<vmem>>, %arg5: memref<32x32xf32, #tpu.memory_space<vmem>>, %arg6: memref<1x32xf32, #tpu.memory_space<vmem>>, %arg7: memref<16x32xf32, #tpu.memory_space<vmem>>, %arg8: memref<1x32xf32, #tpu.memory_space<vmem>>, %arg9: memref<32x32xf32, #tpu.memory_space<vmem>>, %arg10: memref<1x32xf32, #tpu.memory_space<vmem>>, %arg11: memref<8x32xf32, #tpu.memory_space<vmem>>, %arg12: memref<1x32xf32, #tpu.memory_space<vmem>>, %arg13: memref<1x32xf32, #tpu.memory_space<vmem>>, %arg14: memref<16x128xf32, #tpu.memory_space<vmem>>, %arg15: memref<128x16xf32, #tpu.memory_space<vmem>>, %arg16: memref<32x128xf32, #tpu.memory_space<vmem>>, %arg17: memref<1x128xf32, #tpu.memory_space<vmem>>, %arg18: memref<2x32x96xf32, #tpu.memory_space<vmem>>, %arg19: memref<2x1x96xf32, #tpu.memory_space<vmem>>, %arg20: memref<2x32x32xf32, #tpu.memory_space<vmem>>, %arg21: memref<2x1x32xf32, #tpu.memory_space<vmem>>, %arg22: memref<2x1x32xf32, #tpu.memory_space<vmem>>, %arg23: memref<2x1x32xf32, #tpu.memory_space<vmem>>, %arg24: memref<2x32x64xf32, #tpu.memory_space<vmem>>, %arg25: memref<2x1x64xf32, #tpu.memory_space<vmem>>, %arg26: memref<2x64x32xf32, #tpu.memory_space<vmem>>, %arg27: memref<2x1x32xf32, #tpu.memory_space<vmem>>, %arg28: memref<2x1x32xf32, #tpu.memory_space<vmem>>, %arg29: memref<2x1x32xf32, #tpu.memory_space<vmem>>, %arg30: memref<1x8x16xf32, #tpu.memory_space<vmem>>) attributes {dimension_semantics = [#tpu.dimension_semantics<parallel>], iteration_bounds = array<i64: 2>, scalar_prefetch = 0 : i64, scratch_operands = 0 : i64, tpu.core_type = #tpu.core_type<tc>, window_params = [{transform_indices = @transform_0, window_bounds = array<i64: 1, 8, 16>}, {transform_indices = @transform_1, window_bounds = array<i64: 1, 1, 8>}, {pipeline_mode = #tpu.pipeline_mode<synchronous>, transform_indices = @transform_2, window_bounds = array<i64: 8, 32>}, {pipeline_mode = #tpu.pipeline_mode<synchronous>, transform_indices = @transform_3, window_bounds = array<i64: 1, 32>}, {pipeline_mode = #tpu.pipeline_mode<synchronous>, transform_indices = @transform_4, window_bounds = array<i64: 32, 32>}, {pipeline_mode = #tpu.pipeline_mode<synchronous>, transform_indices = @transform_5, window_bounds = array<i64: 1, 32>}, {pipeline_mode = #tpu.pipeline_mode<synchronous>, transform_indices = @transform_6, window_bounds = array<i64: 16, 32>}, {pipeline_mode = #tpu.pipeline_mode<synchronous>, transform_indices = @transform_7, window_bounds = array<i64: 1, 32>}, {pipeline_mode = #tpu.pipeline_mode<synchronous>, transform_indices = @transform_8, window_bounds = array<i64: 32, 32>}, {pipeline_mode = #tpu.pipeline_mode<synchronous>, transform_indices = @transform_9, window_bounds = array<i64: 1, 32>}, {pipeline_mode = #tpu.pipeline_mode<synchronous>, transform_indices = @transform_10, window_bounds = array<i64: 8, 32>}, {pipeline_mode = #tpu.pipeline_mode<synchronous>, transform_indices = @transform_11, window_bounds = array<i64: 1, 32>}, {pipeline_mode = #tpu.pipeline_mode<synchronous>, transform_indices = @transform_12, window_bounds = array<i64: 1, 32>}, {pipeline_mode = #tpu.pipeline_mode<synchronous>, transform_indices = @transform_13, window_bounds = array<i64: 16, 128>}, {pipeline_mode = #tpu.pipeline_mode<synchronous>, transform_indices = @transform_14, window_bounds = array<i64: 128, 16>}, {pipeline_mode = #tpu.pipeline_mode<synchronous>, transform_indices = @transform_15, window_bounds = array<i64: 32, 128>}, {pipeline_mode = #tpu.pipeline_mode<synchronous>, transform_indices = @transform_16, window_bounds = array<i64: 1, 128>}, {pipeline_mode = #tpu.pipeline_mode<synchronous>, transform_indices = @transform_17, window_bounds = array<i64: 2, 32, 96>}, {pipeline_mode = #tpu.pipeline_mode<synchronous>, transform_indices = @transform_18, window_bounds = array<i64: 2, 1, 96>}, {pipeline_mode = #tpu.pipeline_mode<synchronous>, transform_indices = @transform_19, window_bounds = array<i64: 2, 32, 32>}, {pipeline_mode = #tpu.pipeline_mode<synchronous>, transform_indices = @transform_20, window_bounds = array<i64: 2, 1, 32>}, {pipeline_mode = #tpu.pipeline_mode<synchronous>, transform_indices = @transform_21, window_bounds = array<i64: 2, 1, 32>}, {pipeline_mode = #tpu.pipeline_mode<synchronous>, transform_indices = @transform_22, window_bounds = array<i64: 2, 1, 32>}, {pipeline_mode = #tpu.pipeline_mode<synchronous>, transform_indices = @transform_23, window_bounds = array<i64: 2, 32, 64>}, {pipeline_mode = #tpu.pipeline_mode<synchronous>, transform_indices = @transform_24, window_bounds = array<i64: 2, 1, 64>}, {pipeline_mode = #tpu.pipeline_mode<synchronous>, transform_indices = @transform_25, window_bounds = array<i64: 2, 64, 32>}, {pipeline_mode = #tpu.pipeline_mode<synchronous>, transform_indices = @transform_26, window_bounds = array<i64: 2, 1, 32>}, {pipeline_mode = #tpu.pipeline_mode<synchronous>, transform_indices = @transform_27, window_bounds = array<i64: 2, 1, 32>}, {pipeline_mode = #tpu.pipeline_mode<synchronous>, transform_indices = @transform_28, window_bounds = array<i64: 2, 1, 32>}, {transform_indices = @transform_29, window_bounds = array<i64: 1, 8, 16>}]} {
    %c0 = arith.constant 0 : index
    %c0_0 = arith.constant 0 : index
    %c0_1 = arith.constant 0 : index
    %0 = vector.load %arg1[%c0, %c0_0, %c0_1] : memref<1x8x16xf32, #tpu.memory_space<vmem>>, vector<1x8x16xf32>
    %1 = vector.shape_cast %0 : vector<1x8x16xf32> to vector<8x16xf32>
    %c0_2 = arith.constant 0 : index
    %c0_3 = arith.constant 0 : index
    %c0_4 = arith.constant 0 : index
    %2 = vector.load %arg2[%c0_2, %c0_3, %c0_4] : memref<1x1x8xf32, #tpu.memory_space<vmem>>, vector<1x1x8xf32>
    %3 = vector.shape_cast %2 : vector<1x1x8xf32> to vector<1x8xf32>
    %c0_5 = arith.constant 0 : index
    %c0_6 = arith.constant 0 : index
    %4 = vector.load %arg3[%c0_5, %c0_6] : memref<8x32xf32, #tpu.memory_space<vmem>>, vector<8x32xf32>
    %cst = arith.constant dense<0.000000e+00> : vector<1x32xf32>
    %5 = tpu.matmul %3, %4, %cst {dimension_numbers = #tpu.dot_dimension_numbers<[1], [0], [0], [1], [0, 0, 1, 1], [], []>} : vector<1x8xf32>, vector<8x32xf32>, vector<1x32xf32> -> vector<1x32xf32>
    %c0_7 = arith.constant 0 : index
    %c0_8 = arith.constant 0 : index
    %6 = vector.load %arg4[%c0_7, %c0_8] : memref<1x32xf32, #tpu.memory_space<vmem>>, vector<1x32xf32>
    %7 = arith.addf %5, %6 : vector<1x32xf32>
    %8 = arith.negf %7 : vector<1x32xf32>
    %9 = math.exp %8 : vector<1x32xf32>
    %cst_9 = arith.constant 1.000000e+00 : f32
    %10 = vector.broadcast %cst_9 : f32 to vector<1x32xf32>
    %11 = arith.addf %10, %9 : vector<1x32xf32>
    %12 = arith.divf %10, %11 : vector<1x32xf32>
    %13 = arith.mulf %7, %12 : vector<1x32xf32>
    %c0_10 = arith.constant 0 : index
    %c0_11 = arith.constant 0 : index
    %14 = vector.load %arg5[%c0_10, %c0_11] : memref<32x32xf32, #tpu.memory_space<vmem>>, vector<32x32xf32>
    %cst_12 = arith.constant dense<0.000000e+00> : vector<1x32xf32>
    %15 = tpu.matmul %13, %14, %cst_12 {dimension_numbers = #tpu.dot_dimension_numbers<[1], [0], [0], [1], [0, 0, 1, 1], [], []>} : vector<1x32xf32>, vector<32x32xf32>, vector<1x32xf32> -> vector<1x32xf32>
    %c0_13 = arith.constant 0 : index
    %c0_14 = arith.constant 0 : index
    %16 = vector.load %arg6[%c0_13, %c0_14] : memref<1x32xf32, #tpu.memory_space<vmem>>, vector<1x32xf32>
    %17 = arith.addf %15, %16 : vector<1x32xf32>
    %c0_15 = arith.constant 0 : index
    %c0_16 = arith.constant 0 : index
    %18 = vector.load %arg7[%c0_15, %c0_16] : memref<16x32xf32, #tpu.memory_space<vmem>>, vector<16x32xf32>
    %cst_17 = arith.constant dense<0.000000e+00> : vector<8x32xf32>
    %19 = tpu.matmul %1, %18, %cst_17 {dimension_numbers = #tpu.dot_dimension_numbers<[1], [0], [0], [1], [0, 0, 1, 1], [], []>} : vector<8x16xf32>, vector<16x32xf32>, vector<8x32xf32> -> vector<8x32xf32>
    %c0_18 = arith.constant 0 : index
    %c0_19 = arith.constant 0 : index
    %20 = vector.load %arg8[%c0_18, %c0_19] : memref<1x32xf32, #tpu.memory_space<vmem>>, vector<1x32xf32>
    %21 = vector.broadcast %20 : vector<1x32xf32> to vector<8x32xf32>
    %22 = arith.addf %19, %21 : vector<8x32xf32>
    %23 = math.tanh %22 : vector<8x32xf32>
    %c0_20 = arith.constant 0 : index
    %c0_21 = arith.constant 0 : index
    %24 = vector.load %arg9[%c0_20, %c0_21] : memref<32x32xf32, #tpu.memory_space<vmem>>, vector<32x32xf32>
    %cst_22 = arith.constant dense<0.000000e+00> : vector<8x32xf32>
    %25 = tpu.matmul %23, %24, %cst_22 {dimension_numbers = #tpu.dot_dimension_numbers<[1], [0], [0], [1], [0, 0, 1, 1], [], []>} : vector<8x32xf32>, vector<32x32xf32>, vector<8x32xf32> -> vector<8x32xf32>
    %c0_23 = arith.constant 0 : index
    %c0_24 = arith.constant 0 : index
    %26 = vector.load %arg10[%c0_23, %c0_24] : memref<1x32xf32, #tpu.memory_space<vmem>>, vector<1x32xf32>
    %27 = vector.broadcast %26 : vector<1x32xf32> to vector<8x32xf32>
    %28 = arith.addf %25, %27 : vector<8x32xf32>
    %c0_25 = arith.constant 0 : index
    %c0_26 = arith.constant 0 : index
    %29 = vector.load %arg11[%c0_25, %c0_26] : memref<8x32xf32, #tpu.memory_space<vmem>>, vector<8x32xf32>
    %30 = arith.addf %28, %29 : vector<8x32xf32>
    %31 = vector.broadcast %17 : vector<1x32xf32> to vector<8x32xf32>
    %32 = arith.addf %30, %31 : vector<8x32xf32>
    %c0_27 = arith.constant 0 : index
    %c0_28 = arith.constant 0 : index
    %33 = vector.load %arg12[%c0_27, %c0_28] : memref<1x32xf32, #tpu.memory_space<vmem>>, vector<1x32xf32>
    %c0_29 = arith.constant 0 : index
    %c0_30 = arith.constant 0 : index
    %34 = vector.load %arg13[%c0_29, %c0_30] : memref<1x32xf32, #tpu.memory_space<vmem>>, vector<1x32xf32>
    %cst_31 = arith.constant dense<0.000000e+00> : vector<8xf32>
    %35 = vector.multi_reduction <add>, %32, %cst_31 [1] : vector<8x32xf32> to vector<8xf32>
    %36 = vector.shape_cast %35 : vector<8xf32> to vector<8x1xf32>
    %cst_32 = arith.constant 3.200000e+01 : f32
    %37 = vector.broadcast %cst_32 : f32 to vector<8x1xf32>
    %38 = arith.divf %36, %37 : vector<8x1xf32>
    %39 = vector.broadcast %38 : vector<8x1xf32> to vector<8x32xf32>
    %40 = arith.subf %32, %39 : vector<8x32xf32>
    %41 = arith.mulf %40, %40 : vector<8x32xf32>
    %cst_33 = arith.constant dense<0.000000e+00> : vector<8xf32>
    %42 = vector.multi_reduction <add>, %41, %cst_33 [1] : vector<8x32xf32> to vector<8xf32>
    %43 = vector.shape_cast %42 : vector<8xf32> to vector<8x1xf32>
    %cst_34 = arith.constant 3.200000e+01 : f32
    %44 = vector.broadcast %cst_34 : f32 to vector<8x1xf32>
    %45 = arith.divf %43, %44 : vector<8x1xf32>
    %cst_35 = arith.constant 9.99999974E-6 : f32
    %46 = vector.broadcast %cst_35 : f32 to vector<8x1xf32>
    %47 = arith.addf %45, %46 : vector<8x1xf32>
    %48 = math.rsqrt %47 : vector<8x1xf32>
    %49 = vector.broadcast %48 : vector<8x1xf32> to vector<8x32xf32>
    %50 = arith.mulf %40, %49 : vector<8x32xf32>
    %51 = vector.broadcast %33 : vector<1x32xf32> to vector<8x32xf32>
    %52 = arith.mulf %50, %51 : vector<8x32xf32>
    %53 = vector.broadcast %34 : vector<1x32xf32> to vector<8x32xf32>
    %54 = arith.addf %52, %53 : vector<8x32xf32>
    %c0_36 = arith.constant 0 : index
    %c0_37 = arith.constant 0 : index
    %55 = vector.load %arg14[%c0_36, %c0_37] : memref<16x128xf32, #tpu.memory_space<vmem>>, vector<16x128xf32>
    %cst_38 = arith.constant dense<0.000000e+00> : vector<8x128xf32>
    %56 = tpu.matmul %1, %55, %cst_38 {dimension_numbers = #tpu.dot_dimension_numbers<[1], [0], [0], [1], [0, 0, 1, 1], [], []>} : vector<8x16xf32>, vector<16x128xf32>, vector<8x128xf32> -> vector<8x128xf32>
    %57 = tpu.iota {dimensions = array<i32: 1>} : vector<8x128xi32>
    %c50_i32 = arith.constant 50 : i32
    %58 = vector.broadcast %c50_i32 : i32 to vector<8x128xi32>
    %59 = arith.cmpi slt, %57, %58 : vector<8x128xi32>
    %cst_39 = arith.constant -1.000000e+30 : f32
    %60 = vector.broadcast %cst_39 : f32 to vector<8x128xf32>
    %61 = arith.select %59, %56, %60 : vector<8x128xi1>, vector<8x128xf32>
    %cst_40 = arith.constant dense<0xFF800000> : vector<8xf32>
    %62 = vector.multi_reduction <maximumf>, %61, %cst_40 [1] : vector<8x128xf32> to vector<8xf32>
    %63 = vector.shape_cast %62 : vector<8xf32> to vector<8x1xf32>
    %64 = arith.sitofp %57 : vector<8x128xi32> to vector<8x128xf32>
    %65 = vector.broadcast %63 : vector<8x1xf32> to vector<8x128xf32>
    %66 = arith.cmpf oge, %61, %65 : vector<8x128xf32>
    %cst_41 = arith.constant 1.280000e+02 : f32
    %67 = vector.broadcast %cst_41 : f32 to vector<8x128xf32>
    %68 = arith.select %66, %64, %67 : vector<8x128xi1>, vector<8x128xf32>
    %cst_42 = arith.constant dense<0x7F800000> : vector<8xf32>
    %69 = vector.multi_reduction <minimumf>, %68, %cst_42 [1] : vector<8x128xf32> to vector<8xf32>
    %70 = vector.shape_cast %69 : vector<8xf32> to vector<8x1xf32>
    %cst_43 = arith.constant 1.000000e+00 : f32
    %71 = vector.broadcast %cst_43 : f32 to vector<8x1xf32>
    %72 = arith.cmpf oeq, %70, %71 : vector<8x1xf32>
    %73 = arith.extui %72 : vector<8x1xi1> to vector<8x1xi32>
    %74 = arith.sitofp %73 : vector<8x1xi32> to vector<8x1xf32>
    %cst_44 = arith.constant 1.000000e+00 : f32
    %75 = vector.broadcast %cst_44 : f32 to vector<8x1xf32>
    %cst_45 = arith.constant dense<0.000000e+00> : vector<8x8xf32>
    %76 = tpu.matmul %75, %74, %cst_45 {dimension_numbers = #tpu.dot_dimension_numbers<[1], [1], [0], [0], [0, 0, 1, 0], [], []>} : vector<8x1xf32>, vector<8x1xf32>, vector<8x8xf32> -> vector<8x8xf32>
    %cst_46 = arith.constant -1.000000e+30 : f32
    %77 = vector.broadcast %cst_46 : f32 to vector<8x8xf32>
    %78 = arith.mulf %76, %77 : vector<8x8xf32>
    %cst_47 = arith.constant 5.65685415 : f32
    %79 = vector.broadcast %cst_47 : f32 to vector<8x32xf32>
    %80 = arith.mulf %54, %79 : vector<8x32xf32>
    %cst_48 = arith.constant 1.000000e+00 : f32
    %81 = vector.broadcast %cst_48 : f32 to vector<8x1xf32>
    %82 = arith.subf %81, %74 : vector<8x1xf32>
    %83 = vector.broadcast %82 : vector<8x1xf32> to vector<8x32xf32>
    %84 = arith.mulf %80, %83 : vector<8x32xf32>
    %c0_49 = arith.constant 0 : index
    %c0_50 = arith.constant 0 : index
    %c0_51 = arith.constant 0 : index
    %85 = vector.load %arg18[%c0_49, %c0_50, %c0_51] : memref<2x32x96xf32, #tpu.memory_space<vmem>>, vector<1x32x96xf32>
    %86 = vector.shape_cast %85 : vector<1x32x96xf32> to vector<32x96xf32>
    %cst_52 = arith.constant dense<0.000000e+00> : vector<8x96xf32>
    %87 = tpu.matmul %84, %86, %cst_52 {dimension_numbers = #tpu.dot_dimension_numbers<[1], [0], [0], [1], [0, 0, 1, 1], [], []>} : vector<8x32xf32>, vector<32x96xf32>, vector<8x96xf32> -> vector<8x96xf32>
    %c0_53 = arith.constant 0 : index
    %c0_54 = arith.constant 0 : index
    %c0_55 = arith.constant 0 : index
    %88 = vector.load %arg19[%c0_53, %c0_54, %c0_55] : memref<2x1x96xf32, #tpu.memory_space<vmem>>, vector<1x1x96xf32>
    %89 = vector.shape_cast %88 : vector<1x1x96xf32> to vector<1x96xf32>
    %90 = vector.broadcast %89 : vector<1x96xf32> to vector<8x96xf32>
    %91 = arith.addf %87, %90 : vector<8x96xf32>
    %92 = vector.extract_strided_slice %91 {offsets = [0, 0], sizes = [8, 8], strides = [1, 1]} : vector<8x96xf32> to vector<8x8xf32>
    %cst_56 = arith.constant 0.353553385 : f32
    %93 = vector.broadcast %cst_56 : f32 to vector<8x8xf32>
    %94 = arith.mulf %92, %93 : vector<8x8xf32>
    %95 = vector.extract_strided_slice %91 {offsets = [0, 32], sizes = [8, 8], strides = [1, 1]} : vector<8x96xf32> to vector<8x8xf32>
    %96 = vector.extract_strided_slice %91 {offsets = [0, 64], sizes = [8, 8], strides = [1, 1]} : vector<8x96xf32> to vector<8x8xf32>
    %cst_57 = arith.constant dense<0.000000e+00> : vector<8x8xf32>
    %97 = tpu.matmul %94, %95, %cst_57 {dimension_numbers = #tpu.dot_dimension_numbers<[1], [1], [0], [0], [0, 0, 1, 0], [], []>} : vector<8x8xf32>, vector<8x8xf32>, vector<8x8xf32> -> vector<8x8xf32>
    %98 = arith.addf %97, %78 : vector<8x8xf32>
    %cst_58 = arith.constant dense<0xFF800000> : vector<8xf32>
    %99 = vector.multi_reduction <maximumf>, %98, %cst_58 [1] : vector<8x8xf32> to vector<8xf32>
    %100 = vector.shape_cast %99 : vector<8xf32> to vector<8x1xf32>
    %101 = vector.broadcast %100 : vector<8x1xf32> to vector<8x8xf32>
    %102 = arith.subf %98, %101 : vector<8x8xf32>
    %103 = math.exp %102 : vector<8x8xf32>
    %cst_59 = arith.constant dense<0.000000e+00> : vector<8xf32>
    %104 = vector.multi_reduction <add>, %103, %cst_59 [1] : vector<8x8xf32> to vector<8xf32>
    %105 = vector.shape_cast %104 : vector<8xf32> to vector<8x1xf32>
    %106 = tpu.reciprocal %105 {approx = true} : vector<8x1xf32> -> vector<8x1xf32>
    %107 = vector.broadcast %106 : vector<8x1xf32> to vector<8x8xf32>
    %108 = arith.mulf %103, %107 : vector<8x8xf32>
    %cst_60 = arith.constant dense<0.000000e+00> : vector<8x8xf32>
    %109 = tpu.matmul %108, %96, %cst_60 {dimension_numbers = #tpu.dot_dimension_numbers<[1], [0], [0], [1], [0, 0, 1, 1], [], []>} : vector<8x8xf32>, vector<8x8xf32>, vector<8x8xf32> -> vector<8x8xf32>
    %110 = vector.extract_strided_slice %91 {offsets = [0, 8], sizes = [8, 8], strides = [1, 1]} : vector<8x96xf32> to vector<8x8xf32>
    %cst_61 = arith.constant 0.353553385 : f32
    %111 = vector.broadcast %cst_61 : f32 to vector<8x8xf32>
    %112 = arith.mulf %110, %111 : vector<8x8xf32>
    %113 = vector.extract_strided_slice %91 {offsets = [0, 40], sizes = [8, 8], strides = [1, 1]} : vector<8x96xf32> to vector<8x8xf32>
    %114 = vector.extract_strided_slice %91 {offsets = [0, 72], sizes = [8, 8], strides = [1, 1]} : vector<8x96xf32> to vector<8x8xf32>
    %cst_62 = arith.constant dense<0.000000e+00> : vector<8x8xf32>
    %115 = tpu.matmul %112, %113, %cst_62 {dimension_numbers = #tpu.dot_dimension_numbers<[1], [1], [0], [0], [0, 0, 1, 0], [], []>} : vector<8x8xf32>, vector<8x8xf32>, vector<8x8xf32> -> vector<8x8xf32>
    %116 = arith.addf %115, %78 : vector<8x8xf32>
    %cst_63 = arith.constant dense<0xFF800000> : vector<8xf32>
    %117 = vector.multi_reduction <maximumf>, %116, %cst_63 [1] : vector<8x8xf32> to vector<8xf32>
    %118 = vector.shape_cast %117 : vector<8xf32> to vector<8x1xf32>
    %119 = vector.broadcast %118 : vector<8x1xf32> to vector<8x8xf32>
    %120 = arith.subf %116, %119 : vector<8x8xf32>
    %121 = math.exp %120 : vector<8x8xf32>
    %cst_64 = arith.constant dense<0.000000e+00> : vector<8xf32>
    %122 = vector.multi_reduction <add>, %121, %cst_64 [1] : vector<8x8xf32> to vector<8xf32>
    %123 = vector.shape_cast %122 : vector<8xf32> to vector<8x1xf32>
    %124 = tpu.reciprocal %123 {approx = true} : vector<8x1xf32> -> vector<8x1xf32>
    %125 = vector.broadcast %124 : vector<8x1xf32> to vector<8x8xf32>
    %126 = arith.mulf %121, %125 : vector<8x8xf32>
    %cst_65 = arith.constant dense<0.000000e+00> : vector<8x8xf32>
    %127 = tpu.matmul %126, %114, %cst_65 {dimension_numbers = #tpu.dot_dimension_numbers<[1], [0], [0], [1], [0, 0, 1, 1], [], []>} : vector<8x8xf32>, vector<8x8xf32>, vector<8x8xf32> -> vector<8x8xf32>
    %128 = vector.extract_strided_slice %91 {offsets = [0, 16], sizes = [8, 8], strides = [1, 1]} : vector<8x96xf32> to vector<8x8xf32>
    %cst_66 = arith.constant 0.353553385 : f32
    %129 = vector.broadcast %cst_66 : f32 to vector<8x8xf32>
    %130 = arith.mulf %128, %129 : vector<8x8xf32>
    %131 = vector.extract_strided_slice %91 {offsets = [0, 48], sizes = [8, 8], strides = [1, 1]} : vector<8x96xf32> to vector<8x8xf32>
    %132 = vector.extract_strided_slice %91 {offsets = [0, 80], sizes = [8, 8], strides = [1, 1]} : vector<8x96xf32> to vector<8x8xf32>
    %cst_67 = arith.constant dense<0.000000e+00> : vector<8x8xf32>
    %133 = tpu.matmul %130, %131, %cst_67 {dimension_numbers = #tpu.dot_dimension_numbers<[1], [1], [0], [0], [0, 0, 1, 0], [], []>} : vector<8x8xf32>, vector<8x8xf32>, vector<8x8xf32> -> vector<8x8xf32>
    %134 = arith.addf %133, %78 : vector<8x8xf32>
    %cst_68 = arith.constant dense<0xFF800000> : vector<8xf32>
    %135 = vector.multi_reduction <maximumf>, %134, %cst_68 [1] : vector<8x8xf32> to vector<8xf32>
    %136 = vector.shape_cast %135 : vector<8xf32> to vector<8x1xf32>
    %137 = vector.broadcast %136 : vector<8x1xf32> to vector<8x8xf32>
    %138 = arith.subf %134, %137 : vector<8x8xf32>
    %139 = math.exp %138 : vector<8x8xf32>
    %cst_69 = arith.constant dense<0.000000e+00> : vector<8xf32>
    %140 = vector.multi_reduction <add>, %139, %cst_69 [1] : vector<8x8xf32> to vector<8xf32>
    %141 = vector.shape_cast %140 : vector<8xf32> to vector<8x1xf32>
    %142 = tpu.reciprocal %141 {approx = true} : vector<8x1xf32> -> vector<8x1xf32>
    %143 = vector.broadcast %142 : vector<8x1xf32> to vector<8x8xf32>
    %144 = arith.mulf %139, %143 : vector<8x8xf32>
    %cst_70 = arith.constant dense<0.000000e+00> : vector<8x8xf32>
    %145 = tpu.matmul %144, %132, %cst_70 {dimension_numbers = #tpu.dot_dimension_numbers<[1], [0], [0], [1], [0, 0, 1, 1], [], []>} : vector<8x8xf32>, vector<8x8xf32>, vector<8x8xf32> -> vector<8x8xf32>
    %146 = vector.extract_strided_slice %91 {offsets = [0, 24], sizes = [8, 8], strides = [1, 1]} : vector<8x96xf32> to vector<8x8xf32>
    %cst_71 = arith.constant 0.353553385 : f32
    %147 = vector.broadcast %cst_71 : f32 to vector<8x8xf32>
    %148 = arith.mulf %146, %147 : vector<8x8xf32>
    %149 = vector.extract_strided_slice %91 {offsets = [0, 56], sizes = [8, 8], strides = [1, 1]} : vector<8x96xf32> to vector<8x8xf32>
    %150 = vector.extract_strided_slice %91 {offsets = [0, 88], sizes = [8, 8], strides = [1, 1]} : vector<8x96xf32> to vector<8x8xf32>
    %cst_72 = arith.constant dense<0.000000e+00> : vector<8x8xf32>
    %151 = tpu.matmul %148, %149, %cst_72 {dimension_numbers = #tpu.dot_dimension_numbers<[1], [1], [0], [0], [0, 0, 1, 0], [], []>} : vector<8x8xf32>, vector<8x8xf32>, vector<8x8xf32> -> vector<8x8xf32>
    %152 = arith.addf %151, %78 : vector<8x8xf32>
    %cst_73 = arith.constant dense<0xFF800000> : vector<8xf32>
    %153 = vector.multi_reduction <maximumf>, %152, %cst_73 [1] : vector<8x8xf32> to vector<8xf32>
    %154 = vector.shape_cast %153 : vector<8xf32> to vector<8x1xf32>
    %155 = vector.broadcast %154 : vector<8x1xf32> to vector<8x8xf32>
    %156 = arith.subf %152, %155 : vector<8x8xf32>
    %157 = math.exp %156 : vector<8x8xf32>
    %cst_74 = arith.constant dense<0.000000e+00> : vector<8xf32>
    %158 = vector.multi_reduction <add>, %157, %cst_74 [1] : vector<8x8xf32> to vector<8xf32>
    %159 = vector.shape_cast %158 : vector<8xf32> to vector<8x1xf32>
    %160 = tpu.reciprocal %159 {approx = true} : vector<8x1xf32> -> vector<8x1xf32>
    %161 = vector.broadcast %160 : vector<8x1xf32> to vector<8x8xf32>
    %162 = arith.mulf %157, %161 : vector<8x8xf32>
    %cst_75 = arith.constant dense<0.000000e+00> : vector<8x8xf32>
    %163 = tpu.matmul %162, %150, %cst_75 {dimension_numbers = #tpu.dot_dimension_numbers<[1], [0], [0], [1], [0, 0, 1, 1], [], []>} : vector<8x8xf32>, vector<8x8xf32>, vector<8x8xf32> -> vector<8x8xf32>
    %164 = tpu.concatenate %109, %127, %145, %163 in 1 : vector<8x8xf32>, vector<8x8xf32>, vector<8x8xf32>, vector<8x8xf32> -> vector<8x32xf32>
    %c0_76 = arith.constant 0 : index
    %c0_77 = arith.constant 0 : index
    %c0_78 = arith.constant 0 : index
    %165 = vector.load %arg20[%c0_76, %c0_77, %c0_78] : memref<2x32x32xf32, #tpu.memory_space<vmem>>, vector<1x32x32xf32>
    %166 = vector.shape_cast %165 : vector<1x32x32xf32> to vector<32x32xf32>
    %cst_79 = arith.constant dense<0.000000e+00> : vector<8x32xf32>
    %167 = tpu.matmul %164, %166, %cst_79 {dimension_numbers = #tpu.dot_dimension_numbers<[1], [0], [0], [1], [0, 0, 1, 1], [], []>} : vector<8x32xf32>, vector<32x32xf32>, vector<8x32xf32> -> vector<8x32xf32>
    %c0_80 = arith.constant 0 : index
    %c0_81 = arith.constant 0 : index
    %c0_82 = arith.constant 0 : index
    %168 = vector.load %arg21[%c0_80, %c0_81, %c0_82] : memref<2x1x32xf32, #tpu.memory_space<vmem>>, vector<1x1x32xf32>
    %169 = vector.shape_cast %168 : vector<1x1x32xf32> to vector<1x32xf32>
    %170 = vector.broadcast %169 : vector<1x32xf32> to vector<8x32xf32>
    %171 = arith.addf %167, %170 : vector<8x32xf32>
    %172 = arith.addf %84, %171 : vector<8x32xf32>
    %c0_83 = arith.constant 0 : index
    %c0_84 = arith.constant 0 : index
    %c0_85 = arith.constant 0 : index
    %173 = vector.load %arg22[%c0_83, %c0_84, %c0_85] : memref<2x1x32xf32, #tpu.memory_space<vmem>>, vector<1x1x32xf32>
    %174 = vector.shape_cast %173 : vector<1x1x32xf32> to vector<1x32xf32>
    %c0_86 = arith.constant 0 : index
    %c0_87 = arith.constant 0 : index
    %c0_88 = arith.constant 0 : index
    %175 = vector.load %arg23[%c0_86, %c0_87, %c0_88] : memref<2x1x32xf32, #tpu.memory_space<vmem>>, vector<1x1x32xf32>
    %176 = vector.shape_cast %175 : vector<1x1x32xf32> to vector<1x32xf32>
    %cst_89 = arith.constant dense<0.000000e+00> : vector<8xf32>
    %177 = vector.multi_reduction <add>, %172, %cst_89 [1] : vector<8x32xf32> to vector<8xf32>
    %178 = vector.shape_cast %177 : vector<8xf32> to vector<8x1xf32>
    %cst_90 = arith.constant 3.200000e+01 : f32
    %179 = vector.broadcast %cst_90 : f32 to vector<8x1xf32>
    %180 = arith.divf %178, %179 : vector<8x1xf32>
    %181 = vector.broadcast %180 : vector<8x1xf32> to vector<8x32xf32>
    %182 = arith.subf %172, %181 : vector<8x32xf32>
    %183 = arith.mulf %182, %182 : vector<8x32xf32>
    %cst_91 = arith.constant dense<0.000000e+00> : vector<8xf32>
    %184 = vector.multi_reduction <add>, %183, %cst_91 [1] : vector<8x32xf32> to vector<8xf32>
    %185 = vector.shape_cast %184 : vector<8xf32> to vector<8x1xf32>
    %cst_92 = arith.constant 3.200000e+01 : f32
    %186 = vector.broadcast %cst_92 : f32 to vector<8x1xf32>
    %187 = arith.divf %185, %186 : vector<8x1xf32>
    %cst_93 = arith.constant 9.99999974E-6 : f32
    %188 = vector.broadcast %cst_93 : f32 to vector<8x1xf32>
    %189 = arith.addf %187, %188 : vector<8x1xf32>
    %190 = math.rsqrt %189 : vector<8x1xf32>
    %191 = vector.broadcast %190 : vector<8x1xf32> to vector<8x32xf32>
    %192 = arith.mulf %182, %191 : vector<8x32xf32>
    %193 = vector.broadcast %174 : vector<1x32xf32> to vector<8x32xf32>
    %194 = arith.mulf %192, %193 : vector<8x32xf32>
    %195 = vector.broadcast %176 : vector<1x32xf32> to vector<8x32xf32>
    %196 = arith.addf %194, %195 : vector<8x32xf32>
    %c0_94 = arith.constant 0 : index
    %c0_95 = arith.constant 0 : index
    %c0_96 = arith.constant 0 : index
    %197 = vector.load %arg24[%c0_94, %c0_95, %c0_96] : memref<2x32x64xf32, #tpu.memory_space<vmem>>, vector<1x32x64xf32>
    %198 = vector.shape_cast %197 : vector<1x32x64xf32> to vector<32x64xf32>
    %cst_97 = arith.constant dense<0.000000e+00> : vector<8x64xf32>
    %199 = tpu.matmul %196, %198, %cst_97 {dimension_numbers = #tpu.dot_dimension_numbers<[1], [0], [0], [1], [0, 0, 1, 1], [], []>} : vector<8x32xf32>, vector<32x64xf32>, vector<8x64xf32> -> vector<8x64xf32>
    %c0_98 = arith.constant 0 : index
    %c0_99 = arith.constant 0 : index
    %c0_100 = arith.constant 0 : index
    %200 = vector.load %arg25[%c0_98, %c0_99, %c0_100] : memref<2x1x64xf32, #tpu.memory_space<vmem>>, vector<1x1x64xf32>
    %201 = vector.shape_cast %200 : vector<1x1x64xf32> to vector<1x64xf32>
    %202 = vector.broadcast %201 : vector<1x64xf32> to vector<8x64xf32>
    %203 = arith.addf %199, %202 : vector<8x64xf32>
    %cst_101 = arith.constant 0.000000e+00 : f32
    %204 = vector.broadcast %cst_101 : f32 to vector<8x64xf32>
    %205 = arith.maximumf %203, %204 : vector<8x64xf32>
    %c0_102 = arith.constant 0 : index
    %c0_103 = arith.constant 0 : index
    %c0_104 = arith.constant 0 : index
    %206 = vector.load %arg26[%c0_102, %c0_103, %c0_104] : memref<2x64x32xf32, #tpu.memory_space<vmem>>, vector<1x64x32xf32>
    %207 = vector.shape_cast %206 : vector<1x64x32xf32> to vector<64x32xf32>
    %cst_105 = arith.constant dense<0.000000e+00> : vector<8x32xf32>
    %208 = tpu.matmul %205, %207, %cst_105 {dimension_numbers = #tpu.dot_dimension_numbers<[1], [0], [0], [1], [0, 0, 1, 1], [], []>} : vector<8x64xf32>, vector<64x32xf32>, vector<8x32xf32> -> vector<8x32xf32>
    %c0_106 = arith.constant 0 : index
    %c0_107 = arith.constant 0 : index
    %c0_108 = arith.constant 0 : index
    %209 = vector.load %arg27[%c0_106, %c0_107, %c0_108] : memref<2x1x32xf32, #tpu.memory_space<vmem>>, vector<1x1x32xf32>
    %210 = vector.shape_cast %209 : vector<1x1x32xf32> to vector<1x32xf32>
    %211 = vector.broadcast %210 : vector<1x32xf32> to vector<8x32xf32>
    %212 = arith.addf %208, %211 : vector<8x32xf32>
    %213 = arith.addf %196, %212 : vector<8x32xf32>
    %c0_109 = arith.constant 0 : index
    %c0_110 = arith.constant 0 : index
    %c0_111 = arith.constant 0 : index
    %214 = vector.load %arg28[%c0_109, %c0_110, %c0_111] : memref<2x1x32xf32, #tpu.memory_space<vmem>>, vector<1x1x32xf32>
    %215 = vector.shape_cast %214 : vector<1x1x32xf32> to vector<1x32xf32>
    %c0_112 = arith.constant 0 : index
    %c0_113 = arith.constant 0 : index
    %c0_114 = arith.constant 0 : index
    %216 = vector.load %arg29[%c0_112, %c0_113, %c0_114] : memref<2x1x32xf32, #tpu.memory_space<vmem>>, vector<1x1x32xf32>
    %217 = vector.shape_cast %216 : vector<1x1x32xf32> to vector<1x32xf32>
    %cst_115 = arith.constant dense<0.000000e+00> : vector<8xf32>
    %218 = vector.multi_reduction <add>, %213, %cst_115 [1] : vector<8x32xf32> to vector<8xf32>
    %219 = vector.shape_cast %218 : vector<8xf32> to vector<8x1xf32>
    %cst_116 = arith.constant 3.200000e+01 : f32
    %220 = vector.broadcast %cst_116 : f32 to vector<8x1xf32>
    %221 = arith.divf %219, %220 : vector<8x1xf32>
    %222 = vector.broadcast %221 : vector<8x1xf32> to vector<8x32xf32>
    %223 = arith.subf %213, %222 : vector<8x32xf32>
    %224 = arith.mulf %223, %223 : vector<8x32xf32>
    %cst_117 = arith.constant dense<0.000000e+00> : vector<8xf32>
    %225 = vector.multi_reduction <add>, %224, %cst_117 [1] : vector<8x32xf32> to vector<8xf32>
    %226 = vector.shape_cast %225 : vector<8xf32> to vector<8x1xf32>
    %cst_118 = arith.constant 3.200000e+01 : f32
    %227 = vector.broadcast %cst_118 : f32 to vector<8x1xf32>
    %228 = arith.divf %226, %227 : vector<8x1xf32>
    %cst_119 = arith.constant 9.99999974E-6 : f32
    %229 = vector.broadcast %cst_119 : f32 to vector<8x1xf32>
    %230 = arith.addf %228, %229 : vector<8x1xf32>
    %231 = math.rsqrt %230 : vector<8x1xf32>
    %232 = vector.broadcast %231 : vector<8x1xf32> to vector<8x32xf32>
    %233 = arith.mulf %223, %232 : vector<8x32xf32>
    %234 = vector.broadcast %215 : vector<1x32xf32> to vector<8x32xf32>
    %235 = arith.mulf %233, %234 : vector<8x32xf32>
    %236 = vector.broadcast %217 : vector<1x32xf32> to vector<8x32xf32>
    %237 = arith.addf %235, %236 : vector<8x32xf32>
    %c1 = arith.constant 1 : index
    %c0_120 = arith.constant 0 : index
    %c0_121 = arith.constant 0 : index
    %238 = vector.load %arg18[%c1, %c0_120, %c0_121] : memref<2x32x96xf32, #tpu.memory_space<vmem>>, vector<1x32x96xf32>
    %239 = vector.shape_cast %238 : vector<1x32x96xf32> to vector<32x96xf32>
    %cst_122 = arith.constant dense<0.000000e+00> : vector<8x96xf32>
    %240 = tpu.matmul %237, %239, %cst_122 {dimension_numbers = #tpu.dot_dimension_numbers<[1], [0], [0], [1], [0, 0, 1, 1], [], []>} : vector<8x32xf32>, vector<32x96xf32>, vector<8x96xf32> -> vector<8x96xf32>
    %c1_123 = arith.constant 1 : index
    %c0_124 = arith.constant 0 : index
    %c0_125 = arith.constant 0 : index
    %241 = vector.load %arg19[%c1_123, %c0_124, %c0_125] : memref<2x1x96xf32, #tpu.memory_space<vmem>>, vector<1x1x96xf32>
    %242 = vector.shape_cast %241 : vector<1x1x96xf32> to vector<1x96xf32>
    %243 = vector.broadcast %242 : vector<1x96xf32> to vector<8x96xf32>
    %244 = arith.addf %240, %243 : vector<8x96xf32>
    %245 = vector.extract_strided_slice %244 {offsets = [0, 0], sizes = [8, 8], strides = [1, 1]} : vector<8x96xf32> to vector<8x8xf32>
    %cst_126 = arith.constant 0.353553385 : f32
    %246 = vector.broadcast %cst_126 : f32 to vector<8x8xf32>
    %247 = arith.mulf %245, %246 : vector<8x8xf32>
    %248 = vector.extract_strided_slice %244 {offsets = [0, 32], sizes = [8, 8], strides = [1, 1]} : vector<8x96xf32> to vector<8x8xf32>
    %249 = vector.extract_strided_slice %244 {offsets = [0, 64], sizes = [8, 8], strides = [1, 1]} : vector<8x96xf32> to vector<8x8xf32>
    %cst_127 = arith.constant dense<0.000000e+00> : vector<8x8xf32>
    %250 = tpu.matmul %247, %248, %cst_127 {dimension_numbers = #tpu.dot_dimension_numbers<[1], [1], [0], [0], [0, 0, 1, 0], [], []>} : vector<8x8xf32>, vector<8x8xf32>, vector<8x8xf32> -> vector<8x8xf32>
    %251 = arith.addf %250, %78 : vector<8x8xf32>
    %cst_128 = arith.constant dense<0xFF800000> : vector<8xf32>
    %252 = vector.multi_reduction <maximumf>, %251, %cst_128 [1] : vector<8x8xf32> to vector<8xf32>
    %253 = vector.shape_cast %252 : vector<8xf32> to vector<8x1xf32>
    %254 = vector.broadcast %253 : vector<8x1xf32> to vector<8x8xf32>
    %255 = arith.subf %251, %254 : vector<8x8xf32>
    %256 = math.exp %255 : vector<8x8xf32>
    %cst_129 = arith.constant dense<0.000000e+00> : vector<8xf32>
    %257 = vector.multi_reduction <add>, %256, %cst_129 [1] : vector<8x8xf32> to vector<8xf32>
    %258 = vector.shape_cast %257 : vector<8xf32> to vector<8x1xf32>
    %259 = tpu.reciprocal %258 {approx = true} : vector<8x1xf32> -> vector<8x1xf32>
    %260 = vector.broadcast %259 : vector<8x1xf32> to vector<8x8xf32>
    %261 = arith.mulf %256, %260 : vector<8x8xf32>
    %cst_130 = arith.constant dense<0.000000e+00> : vector<8x8xf32>
    %262 = tpu.matmul %261, %249, %cst_130 {dimension_numbers = #tpu.dot_dimension_numbers<[1], [0], [0], [1], [0, 0, 1, 1], [], []>} : vector<8x8xf32>, vector<8x8xf32>, vector<8x8xf32> -> vector<8x8xf32>
    %263 = vector.extract_strided_slice %244 {offsets = [0, 8], sizes = [8, 8], strides = [1, 1]} : vector<8x96xf32> to vector<8x8xf32>
    %cst_131 = arith.constant 0.353553385 : f32
    %264 = vector.broadcast %cst_131 : f32 to vector<8x8xf32>
    %265 = arith.mulf %263, %264 : vector<8x8xf32>
    %266 = vector.extract_strided_slice %244 {offsets = [0, 40], sizes = [8, 8], strides = [1, 1]} : vector<8x96xf32> to vector<8x8xf32>
    %267 = vector.extract_strided_slice %244 {offsets = [0, 72], sizes = [8, 8], strides = [1, 1]} : vector<8x96xf32> to vector<8x8xf32>
    %cst_132 = arith.constant dense<0.000000e+00> : vector<8x8xf32>
    %268 = tpu.matmul %265, %266, %cst_132 {dimension_numbers = #tpu.dot_dimension_numbers<[1], [1], [0], [0], [0, 0, 1, 0], [], []>} : vector<8x8xf32>, vector<8x8xf32>, vector<8x8xf32> -> vector<8x8xf32>
    %269 = arith.addf %268, %78 : vector<8x8xf32>
    %cst_133 = arith.constant dense<0xFF800000> : vector<8xf32>
    %270 = vector.multi_reduction <maximumf>, %269, %cst_133 [1] : vector<8x8xf32> to vector<8xf32>
    %271 = vector.shape_cast %270 : vector<8xf32> to vector<8x1xf32>
    %272 = vector.broadcast %271 : vector<8x1xf32> to vector<8x8xf32>
    %273 = arith.subf %269, %272 : vector<8x8xf32>
    %274 = math.exp %273 : vector<8x8xf32>
    %cst_134 = arith.constant dense<0.000000e+00> : vector<8xf32>
    %275 = vector.multi_reduction <add>, %274, %cst_134 [1] : vector<8x8xf32> to vector<8xf32>
    %276 = vector.shape_cast %275 : vector<8xf32> to vector<8x1xf32>
    %277 = tpu.reciprocal %276 {approx = true} : vector<8x1xf32> -> vector<8x1xf32>
    %278 = vector.broadcast %277 : vector<8x1xf32> to vector<8x8xf32>
    %279 = arith.mulf %274, %278 : vector<8x8xf32>
    %cst_135 = arith.constant dense<0.000000e+00> : vector<8x8xf32>
    %280 = tpu.matmul %279, %267, %cst_135 {dimension_numbers = #tpu.dot_dimension_numbers<[1], [0], [0], [1], [0, 0, 1, 1], [], []>} : vector<8x8xf32>, vector<8x8xf32>, vector<8x8xf32> -> vector<8x8xf32>
    %281 = vector.extract_strided_slice %244 {offsets = [0, 16], sizes = [8, 8], strides = [1, 1]} : vector<8x96xf32> to vector<8x8xf32>
    %cst_136 = arith.constant 0.353553385 : f32
    %282 = vector.broadcast %cst_136 : f32 to vector<8x8xf32>
    %283 = arith.mulf %281, %282 : vector<8x8xf32>
    %284 = vector.extract_strided_slice %244 {offsets = [0, 48], sizes = [8, 8], strides = [1, 1]} : vector<8x96xf32> to vector<8x8xf32>
    %285 = vector.extract_strided_slice %244 {offsets = [0, 80], sizes = [8, 8], strides = [1, 1]} : vector<8x96xf32> to vector<8x8xf32>
    %cst_137 = arith.constant dense<0.000000e+00> : vector<8x8xf32>
    %286 = tpu.matmul %283, %284, %cst_137 {dimension_numbers = #tpu.dot_dimension_numbers<[1], [1], [0], [0], [0, 0, 1, 0], [], []>} : vector<8x8xf32>, vector<8x8xf32>, vector<8x8xf32> -> vector<8x8xf32>
    %287 = arith.addf %286, %78 : vector<8x8xf32>
    %cst_138 = arith.constant dense<0xFF800000> : vector<8xf32>
    %288 = vector.multi_reduction <maximumf>, %287, %cst_138 [1] : vector<8x8xf32> to vector<8xf32>
    %289 = vector.shape_cast %288 : vector<8xf32> to vector<8x1xf32>
    %290 = vector.broadcast %289 : vector<8x1xf32> to vector<8x8xf32>
    %291 = arith.subf %287, %290 : vector<8x8xf32>
    %292 = math.exp %291 : vector<8x8xf32>
    %cst_139 = arith.constant dense<0.000000e+00> : vector<8xf32>
    %293 = vector.multi_reduction <add>, %292, %cst_139 [1] : vector<8x8xf32> to vector<8xf32>
    %294 = vector.shape_cast %293 : vector<8xf32> to vector<8x1xf32>
    %295 = tpu.reciprocal %294 {approx = true} : vector<8x1xf32> -> vector<8x1xf32>
    %296 = vector.broadcast %295 : vector<8x1xf32> to vector<8x8xf32>
    %297 = arith.mulf %292, %296 : vector<8x8xf32>
    %cst_140 = arith.constant dense<0.000000e+00> : vector<8x8xf32>
    %298 = tpu.matmul %297, %285, %cst_140 {dimension_numbers = #tpu.dot_dimension_numbers<[1], [0], [0], [1], [0, 0, 1, 1], [], []>} : vector<8x8xf32>, vector<8x8xf32>, vector<8x8xf32> -> vector<8x8xf32>
    %299 = vector.extract_strided_slice %244 {offsets = [0, 24], sizes = [8, 8], strides = [1, 1]} : vector<8x96xf32> to vector<8x8xf32>
    %cst_141 = arith.constant 0.353553385 : f32
    %300 = vector.broadcast %cst_141 : f32 to vector<8x8xf32>
    %301 = arith.mulf %299, %300 : vector<8x8xf32>
    %302 = vector.extract_strided_slice %244 {offsets = [0, 56], sizes = [8, 8], strides = [1, 1]} : vector<8x96xf32> to vector<8x8xf32>
    %303 = vector.extract_strided_slice %244 {offsets = [0, 88], sizes = [8, 8], strides = [1, 1]} : vector<8x96xf32> to vector<8x8xf32>
    %cst_142 = arith.constant dense<0.000000e+00> : vector<8x8xf32>
    %304 = tpu.matmul %301, %302, %cst_142 {dimension_numbers = #tpu.dot_dimension_numbers<[1], [1], [0], [0], [0, 0, 1, 0], [], []>} : vector<8x8xf32>, vector<8x8xf32>, vector<8x8xf32> -> vector<8x8xf32>
    %305 = arith.addf %304, %78 : vector<8x8xf32>
    %cst_143 = arith.constant dense<0xFF800000> : vector<8xf32>
    %306 = vector.multi_reduction <maximumf>, %305, %cst_143 [1] : vector<8x8xf32> to vector<8xf32>
    %307 = vector.shape_cast %306 : vector<8xf32> to vector<8x1xf32>
    %308 = vector.broadcast %307 : vector<8x1xf32> to vector<8x8xf32>
    %309 = arith.subf %305, %308 : vector<8x8xf32>
    %310 = math.exp %309 : vector<8x8xf32>
    %cst_144 = arith.constant dense<0.000000e+00> : vector<8xf32>
    %311 = vector.multi_reduction <add>, %310, %cst_144 [1] : vector<8x8xf32> to vector<8xf32>
    %312 = vector.shape_cast %311 : vector<8xf32> to vector<8x1xf32>
    %313 = tpu.reciprocal %312 {approx = true} : vector<8x1xf32> -> vector<8x1xf32>
    %314 = vector.broadcast %313 : vector<8x1xf32> to vector<8x8xf32>
    %315 = arith.mulf %310, %314 : vector<8x8xf32>
    %cst_145 = arith.constant dense<0.000000e+00> : vector<8x8xf32>
    %316 = tpu.matmul %315, %303, %cst_145 {dimension_numbers = #tpu.dot_dimension_numbers<[1], [0], [0], [1], [0, 0, 1, 1], [], []>} : vector<8x8xf32>, vector<8x8xf32>, vector<8x8xf32> -> vector<8x8xf32>
    %317 = tpu.concatenate %262, %280, %298, %316 in 1 : vector<8x8xf32>, vector<8x8xf32>, vector<8x8xf32>, vector<8x8xf32> -> vector<8x32xf32>
    %c1_146 = arith.constant 1 : index
    %c0_147 = arith.constant 0 : index
    %c0_148 = arith.constant 0 : index
    %318 = vector.load %arg20[%c1_146, %c0_147, %c0_148] : memref<2x32x32xf32, #tpu.memory_space<vmem>>, vector<1x32x32xf32>
    %319 = vector.shape_cast %318 : vector<1x32x32xf32> to vector<32x32xf32>
    %cst_149 = arith.constant dense<0.000000e+00> : vector<8x32xf32>
    %320 = tpu.matmul %317, %319, %cst_149 {dimension_numbers = #tpu.dot_dimension_numbers<[1], [0], [0], [1], [0, 0, 1, 1], [], []>} : vector<8x32xf32>, vector<32x32xf32>, vector<8x32xf32> -> vector<8x32xf32>
    %c1_150 = arith.constant 1 : index
    %c0_151 = arith.constant 0 : index
    %c0_152 = arith.constant 0 : index
    %321 = vector.load %arg21[%c1_150, %c0_151, %c0_152] : memref<2x1x32xf32, #tpu.memory_space<vmem>>, vector<1x1x32xf32>
    %322 = vector.shape_cast %321 : vector<1x1x32xf32> to vector<1x32xf32>
    %323 = vector.broadcast %322 : vector<1x32xf32> to vector<8x32xf32>
    %324 = arith.addf %320, %323 : vector<8x32xf32>
    %325 = arith.addf %237, %324 : vector<8x32xf32>
    %c1_153 = arith.constant 1 : index
    %c0_154 = arith.constant 0 : index
    %c0_155 = arith.constant 0 : index
    %326 = vector.load %arg22[%c1_153, %c0_154, %c0_155] : memref<2x1x32xf32, #tpu.memory_space<vmem>>, vector<1x1x32xf32>
    %327 = vector.shape_cast %326 : vector<1x1x32xf32> to vector<1x32xf32>
    %c1_156 = arith.constant 1 : index
    %c0_157 = arith.constant 0 : index
    %c0_158 = arith.constant 0 : index
    %328 = vector.load %arg23[%c1_156, %c0_157, %c0_158] : memref<2x1x32xf32, #tpu.memory_space<vmem>>, vector<1x1x32xf32>
    %329 = vector.shape_cast %328 : vector<1x1x32xf32> to vector<1x32xf32>
    %cst_159 = arith.constant dense<0.000000e+00> : vector<8xf32>
    %330 = vector.multi_reduction <add>, %325, %cst_159 [1] : vector<8x32xf32> to vector<8xf32>
    %331 = vector.shape_cast %330 : vector<8xf32> to vector<8x1xf32>
    %cst_160 = arith.constant 3.200000e+01 : f32
    %332 = vector.broadcast %cst_160 : f32 to vector<8x1xf32>
    %333 = arith.divf %331, %332 : vector<8x1xf32>
    %334 = vector.broadcast %333 : vector<8x1xf32> to vector<8x32xf32>
    %335 = arith.subf %325, %334 : vector<8x32xf32>
    %336 = arith.mulf %335, %335 : vector<8x32xf32>
    %cst_161 = arith.constant dense<0.000000e+00> : vector<8xf32>
    %337 = vector.multi_reduction <add>, %336, %cst_161 [1] : vector<8x32xf32> to vector<8xf32>
    %338 = vector.shape_cast %337 : vector<8xf32> to vector<8x1xf32>
    %cst_162 = arith.constant 3.200000e+01 : f32
    %339 = vector.broadcast %cst_162 : f32 to vector<8x1xf32>
    %340 = arith.divf %338, %339 : vector<8x1xf32>
    %cst_163 = arith.constant 9.99999974E-6 : f32
    %341 = vector.broadcast %cst_163 : f32 to vector<8x1xf32>
    %342 = arith.addf %340, %341 : vector<8x1xf32>
    %343 = math.rsqrt %342 : vector<8x1xf32>
    %344 = vector.broadcast %343 : vector<8x1xf32> to vector<8x32xf32>
    %345 = arith.mulf %335, %344 : vector<8x32xf32>
    %346 = vector.broadcast %327 : vector<1x32xf32> to vector<8x32xf32>
    %347 = arith.mulf %345, %346 : vector<8x32xf32>
    %348 = vector.broadcast %329 : vector<1x32xf32> to vector<8x32xf32>
    %349 = arith.addf %347, %348 : vector<8x32xf32>
    %c1_164 = arith.constant 1 : index
    %c0_165 = arith.constant 0 : index
    %c0_166 = arith.constant 0 : index
    %350 = vector.load %arg24[%c1_164, %c0_165, %c0_166] : memref<2x32x64xf32, #tpu.memory_space<vmem>>, vector<1x32x64xf32>
    %351 = vector.shape_cast %350 : vector<1x32x64xf32> to vector<32x64xf32>
    %cst_167 = arith.constant dense<0.000000e+00> : vector<8x64xf32>
    %352 = tpu.matmul %349, %351, %cst_167 {dimension_numbers = #tpu.dot_dimension_numbers<[1], [0], [0], [1], [0, 0, 1, 1], [], []>} : vector<8x32xf32>, vector<32x64xf32>, vector<8x64xf32> -> vector<8x64xf32>
    %c1_168 = arith.constant 1 : index
    %c0_169 = arith.constant 0 : index
    %c0_170 = arith.constant 0 : index
    %353 = vector.load %arg25[%c1_168, %c0_169, %c0_170] : memref<2x1x64xf32, #tpu.memory_space<vmem>>, vector<1x1x64xf32>
    %354 = vector.shape_cast %353 : vector<1x1x64xf32> to vector<1x64xf32>
    %355 = vector.broadcast %354 : vector<1x64xf32> to vector<8x64xf32>
    %356 = arith.addf %352, %355 : vector<8x64xf32>
    %cst_171 = arith.constant 0.000000e+00 : f32
    %357 = vector.broadcast %cst_171 : f32 to vector<8x64xf32>
    %358 = arith.maximumf %356, %357 : vector<8x64xf32>
    %c1_172 = arith.constant 1 : index
    %c0_173 = arith.constant 0 : index
    %c0_174 = arith.constant 0 : index
    %359 = vector.load %arg26[%c1_172, %c0_173, %c0_174] : memref<2x64x32xf32, #tpu.memory_space<vmem>>, vector<1x64x32xf32>
    %360 = vector.shape_cast %359 : vector<1x64x32xf32> to vector<64x32xf32>
    %cst_175 = arith.constant dense<0.000000e+00> : vector<8x32xf32>
    %361 = tpu.matmul %358, %360, %cst_175 {dimension_numbers = #tpu.dot_dimension_numbers<[1], [0], [0], [1], [0, 0, 1, 1], [], []>} : vector<8x64xf32>, vector<64x32xf32>, vector<8x32xf32> -> vector<8x32xf32>
    %c1_176 = arith.constant 1 : index
    %c0_177 = arith.constant 0 : index
    %c0_178 = arith.constant 0 : index
    %362 = vector.load %arg27[%c1_176, %c0_177, %c0_178] : memref<2x1x32xf32, #tpu.memory_space<vmem>>, vector<1x1x32xf32>
    %363 = vector.shape_cast %362 : vector<1x1x32xf32> to vector<1x32xf32>
    %364 = vector.broadcast %363 : vector<1x32xf32> to vector<8x32xf32>
    %365 = arith.addf %361, %364 : vector<8x32xf32>
    %366 = arith.addf %349, %365 : vector<8x32xf32>
    %c1_179 = arith.constant 1 : index
    %c0_180 = arith.constant 0 : index
    %c0_181 = arith.constant 0 : index
    %367 = vector.load %arg28[%c1_179, %c0_180, %c0_181] : memref<2x1x32xf32, #tpu.memory_space<vmem>>, vector<1x1x32xf32>
    %368 = vector.shape_cast %367 : vector<1x1x32xf32> to vector<1x32xf32>
    %c1_182 = arith.constant 1 : index
    %c0_183 = arith.constant 0 : index
    %c0_184 = arith.constant 0 : index
    %369 = vector.load %arg29[%c1_182, %c0_183, %c0_184] : memref<2x1x32xf32, #tpu.memory_space<vmem>>, vector<1x1x32xf32>
    %370 = vector.shape_cast %369 : vector<1x1x32xf32> to vector<1x32xf32>
    %cst_185 = arith.constant dense<0.000000e+00> : vector<8xf32>
    %371 = vector.multi_reduction <add>, %366, %cst_185 [1] : vector<8x32xf32> to vector<8xf32>
    %372 = vector.shape_cast %371 : vector<8xf32> to vector<8x1xf32>
    %cst_186 = arith.constant 3.200000e+01 : f32
    %373 = vector.broadcast %cst_186 : f32 to vector<8x1xf32>
    %374 = arith.divf %372, %373 : vector<8x1xf32>
    %375 = vector.broadcast %374 : vector<8x1xf32> to vector<8x32xf32>
    %376 = arith.subf %366, %375 : vector<8x32xf32>
    %377 = arith.mulf %376, %376 : vector<8x32xf32>
    %cst_187 = arith.constant dense<0.000000e+00> : vector<8xf32>
    %378 = vector.multi_reduction <add>, %377, %cst_187 [1] : vector<8x32xf32> to vector<8xf32>
    %379 = vector.shape_cast %378 : vector<8xf32> to vector<8x1xf32>
    %cst_188 = arith.constant 3.200000e+01 : f32
    %380 = vector.broadcast %cst_188 : f32 to vector<8x1xf32>
    %381 = arith.divf %379, %380 : vector<8x1xf32>
    %cst_189 = arith.constant 9.99999974E-6 : f32
    %382 = vector.broadcast %cst_189 : f32 to vector<8x1xf32>
    %383 = arith.addf %381, %382 : vector<8x1xf32>
    %384 = math.rsqrt %383 : vector<8x1xf32>
    %385 = vector.broadcast %384 : vector<8x1xf32> to vector<8x32xf32>
    %386 = arith.mulf %376, %385 : vector<8x32xf32>
    %387 = vector.broadcast %368 : vector<1x32xf32> to vector<8x32xf32>
    %388 = arith.mulf %386, %387 : vector<8x32xf32>
    %389 = vector.broadcast %370 : vector<1x32xf32> to vector<8x32xf32>
    %390 = arith.addf %388, %389 : vector<8x32xf32>
    %c0_190 = arith.constant 0 : index
    %c0_191 = arith.constant 0 : index
    %391 = vector.load %arg16[%c0_190, %c0_191] : memref<32x128xf32, #tpu.memory_space<vmem>>, vector<32x128xf32>
    %cst_192 = arith.constant dense<0.000000e+00> : vector<8x128xf32>
    %392 = tpu.matmul %390, %391, %cst_192 {dimension_numbers = #tpu.dot_dimension_numbers<[1], [0], [0], [1], [0, 0, 1, 1], [], []>} : vector<8x32xf32>, vector<32x128xf32>, vector<8x128xf32> -> vector<8x128xf32>
    %c0_193 = arith.constant 0 : index
    %c0_194 = arith.constant 0 : index
    %393 = vector.load %arg17[%c0_193, %c0_194] : memref<1x128xf32, #tpu.memory_space<vmem>>, vector<1x128xf32>
    %394 = vector.broadcast %393 : vector<1x128xf32> to vector<8x128xf32>
    %395 = arith.addf %392, %394 : vector<8x128xf32>
    %cst_195 = arith.constant -1.000000e+30 : f32
    %396 = vector.broadcast %cst_195 : f32 to vector<8x128xf32>
    %397 = arith.select %59, %395, %396 : vector<8x128xi1>, vector<8x128xf32>
    %cst_196 = arith.constant dense<0xFF800000> : vector<8xf32>
    %398 = vector.multi_reduction <maximumf>, %397, %cst_196 [1] : vector<8x128xf32> to vector<8xf32>
    %399 = vector.shape_cast %398 : vector<8xf32> to vector<8x1xf32>
    %400 = vector.broadcast %399 : vector<8x1xf32> to vector<8x128xf32>
    %401 = arith.subf %397, %400 : vector<8x128xf32>
    %402 = math.exp %401 : vector<8x128xf32>
    %cst_197 = arith.constant dense<0.000000e+00> : vector<8xf32>
    %403 = vector.multi_reduction <add>, %402, %cst_197 [1] : vector<8x128xf32> to vector<8xf32>
    %404 = vector.shape_cast %403 : vector<8xf32> to vector<8x1xf32>
    %405 = tpu.reciprocal %404 {approx = true} : vector<8x1xf32> -> vector<8x1xf32>
    %406 = vector.broadcast %405 : vector<8x1xf32> to vector<8x128xf32>
    %407 = arith.mulf %402, %406 : vector<8x128xf32>
    %c0_198 = arith.constant 0 : index
    %c0_199 = arith.constant 0 : index
    %408 = vector.load %arg15[%c0_198, %c0_199] : memref<128x16xf32, #tpu.memory_space<vmem>>, vector<128x16xf32>
    %cst_200 = arith.constant dense<0.000000e+00> : vector<8x16xf32>
    %409 = tpu.matmul %407, %408, %cst_200 {dimension_numbers = #tpu.dot_dimension_numbers<[1], [0], [0], [1], [0, 0, 1, 1], [], []>} : vector<8x128xf32>, vector<128x16xf32>, vector<8x16xf32> -> vector<8x16xf32>
    %c0_201 = arith.constant 0 : index
    %c0_202 = arith.constant 0 : index
    %c0_203 = arith.constant 0 : index
    %410 = vector.load %arg30[%c0_201, %c0_202, %c0_203] : memref<1x8x16xf32, #tpu.memory_space<vmem>>, vector<1x8x16xf32>
    %411 = vector.shape_cast %410 : vector<1x8x16xf32> to vector<8x16xf32>
    %412 = vector.shape_cast %409 : vector<8x16xf32> to vector<1x8x16xf32>
    tpu.vector_store %arg30[%c0_201, %c0_202, %c0_203], %412 {strides = array<i32>} : memref<1x8x16xf32, #tpu.memory_space<vmem>>, vector<1x8x16xf32>,
    return
  }
  func.func @transform_0(%arg0: i32) -> (i32, i32, i32) {
    %c0_i32 = arith.constant 0 : i32
    %c0_i32_0 = arith.constant 0 : i32
    %c0_i32_1 = arith.constant 0 : i32
    return %arg0, %c0_i32, %c0_i32_0 : i32, i32, i32
  }
  func.func @transform_1(%arg0: i32) -> (i32, i32, i32) {
    %c0_i32 = arith.constant 0 : i32
    %c0_i32_0 = arith.constant 0 : i32
    %c0_i32_1 = arith.constant 0 : i32
    return %arg0, %c0_i32, %c0_i32_0 : i32, i32, i32
  }
  func.func @transform_2(%arg0: i32) -> (i32, i32) {
    %c0_i32 = arith.constant 0 : i32
    %c0_i32_0 = arith.constant 0 : i32
    %c0_i32_1 = arith.constant 0 : i32
    return %c0_i32, %c0_i32_0 : i32, i32
  }
  func.func @transform_3(%arg0: i32) -> (i32, i32) {
    %c0_i32 = arith.constant 0 : i32
    %c0_i32_0 = arith.constant 0 : i32
    %c0_i32_1 = arith.constant 0 : i32
    return %c0_i32, %c0_i32_0 : i32, i32
  }
  func.func @transform_4(%arg0: i32) -> (i32, i32) {
    %c0_i32 = arith.constant 0 : i32
    %c0_i32_0 = arith.constant 0 : i32
    %c0_i32_1 = arith.constant 0 : i32
    return %c0_i32, %c0_i32_0 : i32, i32
  }
  func.func @transform_5(%arg0: i32) -> (i32, i32) {
    %c0_i32 = arith.constant 0 : i32
    %c0_i32_0 = arith.constant 0 : i32
    %c0_i32_1 = arith.constant 0 : i32
    return %c0_i32, %c0_i32_0 : i32, i32
  }
  func.func @transform_6(%arg0: i32) -> (i32, i32) {
    %c0_i32 = arith.constant 0 : i32
    %c0_i32_0 = arith.constant 0 : i32
    %c0_i32_1 = arith.constant 0 : i32
    return %c0_i32, %c0_i32_0 : i32, i32
  }
  func.func @transform_7(%arg0: i32) -> (i32, i32) {
    %c0_i32 = arith.constant 0 : i32
    %c0_i32_0 = arith.constant 0 : i32
    %c0_i32_1 = arith.constant 0 : i32
    return %c0_i32, %c0_i32_0 : i32, i32
  }
  func.func @transform_8(%arg0: i32) -> (i32, i32) {
    %c0_i32 = arith.constant 0 : i32
    %c0_i32_0 = arith.constant 0 : i32
    %c0_i32_1 = arith.constant 0 : i32
    return %c0_i32, %c0_i32_0 : i32, i32
  }
  func.func @transform_9(%arg0: i32) -> (i32, i32) {
    %c0_i32 = arith.constant 0 : i32
    %c0_i32_0 = arith.constant 0 : i32
    %c0_i32_1 = arith.constant 0 : i32
    return %c0_i32, %c0_i32_0 : i32, i32
  }
  func.func @transform_10(%arg0: i32) -> (i32, i32) {
    %c0_i32 = arith.constant 0 : i32
    %c0_i32_0 = arith.constant 0 : i32
    %c0_i32_1 = arith.constant 0 : i32
    return %c0_i32, %c0_i32_0 : i32, i32
  }
  func.func @transform_11(%arg0: i32) -> (i32, i32) {
    %c0_i32 = arith.constant 0 : i32
    %c0_i32_0 = arith.constant 0 : i32
    %c0_i32_1 = arith.constant 0 : i32
    return %c0_i32, %c0_i32_0 : i32, i32
  }
  func.func @transform_12(%arg0: i32) -> (i32, i32) {
    %c0_i32 = arith.constant 0 : i32
    %c0_i32_0 = arith.constant 0 : i32
    %c0_i32_1 = arith.constant 0 : i32
    return %c0_i32, %c0_i32_0 : i32, i32
  }
  func.func @transform_13(%arg0: i32) -> (i32, i32) {
    %c0_i32 = arith.constant 0 : i32
    %c0_i32_0 = arith.constant 0 : i32
    %c0_i32_1 = arith.constant 0 : i32
    return %c0_i32, %c0_i32_0 : i32, i32
  }
  func.func @transform_14(%arg0: i32) -> (i32, i32) {
    %c0_i32 = arith.constant 0 : i32
    %c0_i32_0 = arith.constant 0 : i32
    %c0_i32_1 = arith.constant 0 : i32
    return %c0_i32, %c0_i32_0 : i32, i32
  }
  func.func @transform_15(%arg0: i32) -> (i32, i32) {
    %c0_i32 = arith.constant 0 : i32
    %c0_i32_0 = arith.constant 0 : i32
    %c0_i32_1 = arith.constant 0 : i32
    return %c0_i32, %c0_i32_0 : i32, i32
  }
  func.func @transform_16(%arg0: i32) -> (i32, i32) {
    %c0_i32 = arith.constant 0 : i32
    %c0_i32_0 = arith.constant 0 : i32
    %c0_i32_1 = arith.constant 0 : i32
    return %c0_i32, %c0_i32_0 : i32, i32
  }
  func.func @transform_17(%arg0: i32) -> (i32, i32, i32) {
    %c0_i32 = arith.constant 0 : i32
    %c0_i32_0 = arith.constant 0 : i32
    %c0_i32_1 = arith.constant 0 : i32
    %c0_i32_2 = arith.constant 0 : i32
    return %c0_i32, %c0_i32_0, %c0_i32_1 : i32, i32, i32
  }
  func.func @transform_18(%arg0: i32) -> (i32, i32, i32) {
    %c0_i32 = arith.constant 0 : i32
    %c0_i32_0 = arith.constant 0 : i32
    %c0_i32_1 = arith.constant 0 : i32
    %c0_i32_2 = arith.constant 0 : i32
    return %c0_i32, %c0_i32_0, %c0_i32_1 : i32, i32, i32
  }
  func.func @transform_19(%arg0: i32) -> (i32, i32, i32) {
    %c0_i32 = arith.constant 0 : i32
    %c0_i32_0 = arith.constant 0 : i32
    %c0_i32_1 = arith.constant 0 : i32
    %c0_i32_2 = arith.constant 0 : i32
    return %c0_i32, %c0_i32_0, %c0_i32_1 : i32, i32, i32
  }
  func.func @transform_20(%arg0: i32) -> (i32, i32, i32) {
    %c0_i32 = arith.constant 0 : i32
    %c0_i32_0 = arith.constant 0 : i32
    %c0_i32_1 = arith.constant 0 : i32
    %c0_i32_2 = arith.constant 0 : i32
    return %c0_i32, %c0_i32_0, %c0_i32_1 : i32, i32, i32
  }
  func.func @transform_21(%arg0: i32) -> (i32, i32, i32) {
    %c0_i32 = arith.constant 0 : i32
    %c0_i32_0 = arith.constant 0 : i32
    %c0_i32_1 = arith.constant 0 : i32
    %c0_i32_2 = arith.constant 0 : i32
    return %c0_i32, %c0_i32_0, %c0_i32_1 : i32, i32, i32
  }
  func.func @transform_22(%arg0: i32) -> (i32, i32, i32) {
    %c0_i32 = arith.constant 0 : i32
    %c0_i32_0 = arith.constant 0 : i32
    %c0_i32_1 = arith.constant 0 : i32
    %c0_i32_2 = arith.constant 0 : i32
    return %c0_i32, %c0_i32_0, %c0_i32_1 : i32, i32, i32
  }
  func.func @transform_23(%arg0: i32) -> (i32, i32, i32) {
    %c0_i32 = arith.constant 0 : i32
    %c0_i32_0 = arith.constant 0 : i32
    %c0_i32_1 = arith.constant 0 : i32
    %c0_i32_2 = arith.constant 0 : i32
    return %c0_i32, %c0_i32_0, %c0_i32_1 : i32, i32, i32
  }
  func.func @transform_24(%arg0: i32) -> (i32, i32, i32) {
    %c0_i32 = arith.constant 0 : i32
    %c0_i32_0 = arith.constant 0 : i32
    %c0_i32_1 = arith.constant 0 : i32
    %c0_i32_2 = arith.constant 0 : i32
    return %c0_i32, %c0_i32_0, %c0_i32_1 : i32, i32, i32
  }
  func.func @transform_25(%arg0: i32) -> (i32, i32, i32) {
    %c0_i32 = arith.constant 0 : i32
    %c0_i32_0 = arith.constant 0 : i32
    %c0_i32_1 = arith.constant 0 : i32
    %c0_i32_2 = arith.constant 0 : i32
    return %c0_i32, %c0_i32_0, %c0_i32_1 : i32, i32, i32
  }
  func.func @transform_26(%arg0: i32) -> (i32, i32, i32) {
    %c0_i32 = arith.constant 0 : i32
    %c0_i32_0 = arith.constant 0 : i32
    %c0_i32_1 = arith.constant 0 : i32
    %c0_i32_2 = arith.constant 0 : i32
    return %c0_i32, %c0_i32_0, %c0_i32_1 : i32, i32, i32
  }
  func.func @transform_27(%arg0: i32) -> (i32, i32, i32) {
    %c0_i32 = arith.constant 0 : i32
    %c0_i32_0 = arith.constant 0 : i32
    %c0_i32_1 = arith.constant 0 : i32
    %c0_i32_2 = arith.constant 0 : i32
    return %c0_i32, %c0_i32_0, %c0_i32_1 : i32, i32, i32
  }
  func.func @transform_28(%arg0: i32) -> (i32, i32, i32) {
    %c0_i32 = arith.constant 0 : i32
    %c0_i32_0 = arith.constant 0 : i32
    %c0_i32_1 = arith.constant 0 : i32
    %c0_i32_2 = arith.constant 0 : i32
    return %c0_i32, %c0_i32_0, %c0_i32_1 : i32, i32, i32
  }
  func.func @transform_29(%arg0: i32) -> (i32, i32, i32) {
    %c0_i32 = arith.constant 0 : i32
    %c0_i32_0 = arith.constant 0 : i32
    %c0_i32_1 = arith.constant 0 : i32
    return %arg0, %c0_i32, %c0_i32_0 : i32, i32, i32
  }
}

</mosaic_0001>

<bundles_post_ra>
// kernel: forward.1
= control target key start
LH: loop header
LB: loop body
LE: loop exit
PB: predicated region body
PF: predicated region fallthrough
CT: control target
= control target key end

     0   :  { %s5375_s6 = smov 1   ;;  %s5376_s10 = smov 2   ;;  %s6211_s0 = inlined_call_operand.smem [shape: u32[30], index: -1, kind: input, shape index: {}] }
   0x1   :  { %s5443_s5 = sld [smem:[%s6211_s0]]   ;;  %s5377_s14 = smov 3  }
   0x2   :  { %s5448_s9 = sld [smem:[%s6211_s0 + %s5375_s6]]   ;;  %s5378_s18 = smov 4  }
   0x3   :  { %s5453_s13 = sld [smem:[%s6211_s0 + %s5376_s10]]   ;;  %s5379_s22 = smov 5  }
   0x4   :  { %s5458_s17 = sld [smem:[%s6211_s0 + %s5377_s14]]   ;;  %s5380_s26 = smov 6  }
   0x5   :  { %s5463_s21 = sld [smem:[%s6211_s0 + %s5378_s18]]   ;;  %s5381_s30 = smov 7  }
   0x6   :  { %s5468_s25 = sld [smem:[%s6211_s0 + %s5379_s22]]   ;;  %s5382_s4 = smov 8  }
   0x7   :  { %s5473_s29 = sld [smem:[%s6211_s0 + %s5380_s26]]   ;;  %s5383_s10 = smov 9  }
   0x8   :  { %s5478_s3 = sld [smem:[%s6211_s0 + %s5381_s30]]   ;;  %s5384_s15 = smov 10  }
   0x9   :  { %s5483_s8 = sld [smem:[%s6211_s0 + %s5382_s4]]   ;;  %s5385_s20 = smov 11  }
   0xa   :  { %s5488_s14 = sld [smem:[%s6211_s0 + %s5383_s10]]   ;;  %s5386_s26 = smov 12  }
   0xb   :  { %s5493_s19 = sld [smem:[%s6211_s0 + %s5384_s15]]   ;;  %s5387_s1 = smov 13  }
   0xc   :  { %6248 = sst [smem:[#allocation27_spill]] %s5468_s25  ;;  %s5388_s7 = smov 14  }
   0xd   :  { %s5498_s24 = sld [smem:[%s6211_s0 + %s5385_s20]]   ;;  %s5389_s15 = smov 15  }
   0xe   :  { %6249 = sst [smem:[#allocation28_spill]] %s5478_s3  ;;  %s5390_s22 = smov 16  }
   0xf   :  { %s5503_s30 = sld [smem:[%s6211_s0 + %s5386_s26]]   ;;  %s5391_s28 = smov 17  }
  0x10   :  { %6250 = sst [smem:[#allocation29_spill]] %s5488_s14 }
  0x11   :  { %6251 = sst [smem:[#allocation30_spill]] %s5493_s19 }
  0x12   :  { %s5508_s6 = sld [smem:[%s6211_s0 + %s5387_s1]]  }
  0x13   :  { %s5513_s12 = sld [smem:[%s6211_s0 + %s5388_s7]]   ;;  %s5392_s7 = smov 18  }
  0x14   :  { %s5518_s20 = sld [smem:[%s6211_s0 + %s5389_s15]]   ;;  %s5393_s15 = smov 19  }
  0x15   :  { %6252 = sst [smem:[#allocation31_spill]] %s5503_s30 }
  0x16   :  { %s5523_s27 = sld [smem:[%s6211_s0 + %s5390_s22]]   ;;  %s5394_s22 = smov 20  }
  0x17   :  { %s5528_s4 = sld [smem:[%s6211_s0 + %s5391_s28]]   ;;  %s5395_s28 = smov 21  }
  0x18   :  { %6253 = sst [smem:[#allocation32_spill]] %s5508_s6 }
  0x19   :  { %6254 = sst [smem:[#allocation33_spill]] %s5513_s12 }
  0x1a   :  { %6255 = sst [smem:[#allocation34_spill]] %s5518_s20 }
  0x1b   :  { %s5533_s12 = sld [smem:[%s6211_s0 + %s5392_s7]]   ;;  %s5396_s7 = smov 22  }
  0x1c   :  { %s5538_s20 = sld [smem:[%s6211_s0 + %s5393_s15]]   ;;  %s5397_s15 = smov 23  }
  0x1d   :  { %6256 = sst [smem:[#allocation35_spill]] %s5528_s4 }
  0x1e   :  { %s5543_s19 = sld [smem:[%s6211_s0 + %s5394_s22]]   ;;  %s5398_s22 = smov 24  }
  0x1f   :  { %s5548_s4 = sld [smem:[%s6211_s0 + %s5395_s28]]   ;;  %s5399_s28 = smov 25  }
  0x20   :  { %s5563_s14 = sld [smem:[%s6211_s0 + %s5398_s22]]   ;;  %s5402_s22 = smov 28  }
  0x21   :  { %6257 = sst [smem:[#allocation36_spill]] %s5533_s12 }
  0x22   :  { %6258 = sst [smem:[#allocation37_spill]] %s5538_s20 }
  0x23   :  { %s5553_s12 = sld [smem:[%s6211_s0 + %s5396_s7]]   ;;  %s5400_s7 = smov 26  }
  0x24   :  { %6259 = sst [smem:[#allocation38_spill]] %s5543_s19 }
  0x25   :  { %6260 = sst [smem:[#allocation39_spill]] %s5548_s4 }
  0x26   :  { %s5558_s20 = sld [smem:[%s6211_s0 + %s5397_s15]]   ;;  %s5401_s15 = smov 27  }
  0x27   :  { %s5568_s25 = sld [smem:[%s6211_s0 + %s5399_s28]]   ;;  %s5403_s28 = smov 29  }
  0x28   :  { %s5573_s6 = sld [smem:[%s6211_s0 + %s5400_s7]]  }
  0x29   :  { %s5583_s3 = sld [smem:[%s6211_s0 + %s5402_s22]]  }
  0x2c   :  { %6261 = sst [smem:[#allocation40_spill]] %s5558_s20 }
  0x2d   :  { %6262 = sst [smem:[#allocation41_spill]] %s5568_s25 }
  0x2e   :  { %s5578_s20 = sld [smem:[%s6211_s0 + %s5401_s15]]  }
  0x2f   :  { %6263 = sst [smem:[#allocation42_spill]] %s5583_s3 }
  0x30   :  { %s5588_s25 = sld [smem:[%s6211_s0 + %s5403_s28]]  }
  0x31   :  { %64 = vsyncpa [#allocation3], 0 }
  0x32   :  { %65 = vsyncpa [#allocation6], 0 }
  0x33   :  { %66 = vsyncpa [#allocation9], 0 }
  0x34   :  { %67 = vsyncpa [#allocation12], 0 }
  0x35   :  { %68 = vsyncpa [#allocation15], 0 }
  0x36   :  { %69 = vsyncpa [#allocation18], 0 }
  0x37   :  { %70 = vsyncpa [#allocation4], 0 }
  0x38   :  { %72 = vsyncpa [#allocation4 + $0x1], 0  ;;  %s5590_s7 = smov 0   ;;  %s5592_s10 = smov 0  }
  0x39   :  { %s5594_s11 = smov 0   ;;  %s5596_s15 = smov 0  }
  0x3a LB: > { %s6264_s4 = sld [smem:[#allocation39_spill]]  ;;  %s6265_s3 = sld [smem:[#allocation42_spill]]  ;;  %s5373_s15 = sphi %s5596_s15, %s6324_s15   ;;  %s5369_s11 = sphi %s5594_s11, %s6326_s11   ;;  %s5365_s10 = sphi %s5592_s10, %s6328_s10   ;;  %s5361_s7 = sphi %s5590_s7, %s6327_s7  }
  0x3b   : > { %s6266_s30 = sld [smem:[#allocation31_spill]]  ;;  %s6267_s19 = sld [smem:[#allocation38_spill]] }
  0x3c   : > { %6268 = sst [smem:[#allocation43_spill]] %s5361_s7  ;;  %s5611_s0 = sadd.s32 4294967295, %s5373_s15  }
  0x3d   : > { %6269 = sst [smem:[#allocation44_spill]] %s5369_s11  ;;  %s4146_s16 = sadd.s32 4294967294, %s5373_s15  }
  0x3e   : > { %6270 = sst [smem:[#allocation45_spill]] %s5373_s15  ;;  %s5615_s18 = sadd.s32 1, %s5373_s15  }
  0x3f   : > { %6271 = sst [smem:[#allocation46_spill]] %s5615_s18  ;;  %s704_s22 = sadd.s32 1, %s5369_s11 }
  0x40   : > { %s701_s23 = ssub.s32 %s5373_s15, %s5615_s18  ;;  %p714_p0 = scmp.ne.s32.totalorder %s5369_s11, %s5365_s10 }
  0x41   : > { %p702_p1 = scmp.eq.s32.totalorder %s701_s23, 0  ;;  %p715_p2 = scmp.eq.s32.totalorder %s5611_s0, 1 }
  0x42   : > { %p720_p3 = scmp.ne.s32.totalorder %s5365_s10, %s5361_s7  ;;  %p721_p4 = scmp.eq.s32.totalorder %s4146_s16, 1 }
  0x43   : > { %s5626_s26 = scalar_select %p702_p1, %s5369_s11, %s704_s22  }
  0x44   : > { %p5628_p5 = por %p715_p2, %p714_p0  ;;  %p5632_p6 = por %p721_p4, %p720_p3 }
  0x45   : > { %6272 = sst [smem:[#allocation47_spill]] %s5626_s26  ;;  %p4147_p7 = scmp.ge.s32.totalorder %s5373_s15, 1 }
  0x46   : > { %s6273_s28 = scalar_select %p5628_p5, 1, 0 }
  0x47   : > { %s6274_s1 = scalar_select %p5632_p6, 1, 0 }
  0x48   : > { %p728_p8 = scmp.lt.s32.totalorder %s5373_s15, 3  ;;  %p6225_p9 = scmp.eq.s32.totalorder %s5611_s0, 0 }
  0x49   : > { %6275 = sst [smem:[#allocation48_spill]] %s6274_s1  ;;  %s5404_s16 = smov [#allocation5]  }
  0x4a   : > { %p5639_p10 = pnand %p4147_p7, %p728_p8  ;;  %s779_s22 = sshll.u32 %s5404_s16, 4  ;;  %s780_s22 = int_to_ptr.vmem [resolvable:$true] %s779_s22 }
  0x4b   : > { %s5405_s23 = smov [#allocation8]   ;;  %s5406_s18 = smov [#allocation11]  }
  0x4c   : > { %s6276_s2 = scalar_select %p5639_p10, 1, 0 }
  0x4d   : > { %p4808_p11 = pneg %p5639_p10  ;;  %s818_s26 = sshll.u32 %s5405_s23, 4  ;;  %s5651_s26 = int_to_ptr.vmem [resolvable:$true] %s818_s26 }
  0x4e   : > { %s5653_s1 = sshll.u32 %s5406_s18, 4  ;;  %s5007_s7 = scalar_lea.hbm %s6266_s30, 16  ;;  %s845_s1 = int_to_ptr.vmem [resolvable:$true] %s5653_s1 }
  0x4f   : > { %p5647_p12 = pnand %p6225_p9, %p4808_p11  ;;  %p5008_p13 = scmp.ne.s32.totalorder %s6266_s30, %s5007_s7 }
  0x50   : > { %p5014_p3 = scmp.lt.u32.totalorder %s5007_s7, %s6266_s30 }
  0x51   : > { %p5659_p0 = pneg %p5647_p12 }
  0x53   : > { %p5010_p1 = pnand %p5659_p0, %p5008_p13 }
  0x55   : > { %p5011_p2 = pneg %p5010_p1 }
  0x57   : > { %p5016_p4 = pnand %p5014_p3, %p5011_p2 }
  0x59   : > { %5019 = shalt.err (!%p5016_p4)
}
  0x5a   : > { %s5020_s23 = scalar_lea.vmem %s780_s22, 16  ;;  %s5027_s18 = scalar_lea.vmem %s780_s22, 32 }
  0x5b   : > { %p5021_p7 = scmp.ne.s32.totalorder %s780_s22, %s5020_s23  ;;  %p5028_p9 = scmp.lt.s32.totalorder %s780_s22, %s780_s22 }
  0x5c   : > { %p5029_p6 = scmp.lt.s32.totalorder %s5027_s18, %s5020_s23 }
  0x5d   : > { %p5023_p8 = pnand %p5021_p7, %p5659_p0 }
  0x5e   : > { %p5030_p5 = por %p5029_p6, %p5028_p9 }
  0x5f   : > { %p5024_p11 = pneg %p5023_p8 }
  0x61   : > { %p5031_p10 = pnand %p5030_p5, %p5024_p11 }
  0x63   : > { %5034 = shalt.err (!%p5031_p10)
}
  0x64   : > { %4814 = dma.hbm_to_vmem [thread:$0]  (!%p5647_p12), %s6266_s30, 16, %s780_s22, [#allocation6]  }
  0x65   : > { %s5035_s7 = scalar_lea.hbm %s6267_s19, 32 }
  0x66   : > { %p5036_p13 = scmp.ne.s32.totalorder %s6267_s19, %s5035_s7  ;;  %p5042_p3 = scmp.lt.u32.totalorder %s5035_s7, %s6267_s19 }
  0x68   : > { %p5038_p1 = pnand %p5036_p13, %p5659_p0 }
  0x6a   : > { %p5039_p2 = pneg %p5038_p1 }
  0x6c   : > { %p5044_p4 = pnand %p5042_p3, %p5039_p2 }
  0x6e   : > { %5047 = shalt.err (!%p5044_p4)
}
  0x6f   : > { %s5048_s23 = scalar_lea.vmem %s5651_s26, 32  ;;  %p5056_p10 = scmp.lt.s32.totalorder %s5651_s26, %s5651_s26 }
  0x70   : > { %p5049_p5 = scmp.ne.s32.totalorder %s5651_s26, %s5048_s23  ;;  %p5057_p7 = scmp.lt.s32.totalorder %s5048_s23, %s5048_s23 }
  0x72   : > { %p5051_p6 = pnand %p5049_p5, %p5659_p0  ;;  %p5058_p8 = por %p5057_p7, %p5056_p10 }
  0x74   : > { %p5052_p9 = pneg %p5051_p6 }
  0x76   : > { %p5059_p11 = pnand %p5058_p8, %p5052_p9 }
  0x78   : > { %5062 = shalt.err (!%p5059_p11)
}
  0x79   : > { %s6231_s22 = smov 16   ;;  %s5408_s18 = smov 1  }
  0x7a   : > { %4820 = dma.hbm_to_vmem [thread:$0]  (!%p5647_p12), %s6267_s19, 32, %s5651_s26, [#allocation9], %s6231_s22, %s6231_s22, %s5408_s18  }
  0x7b   : > { %s5063_s7 = scalar_lea.hbm %s5553_s12, 32 }
  0x7c   : > { %p5064_p13 = scmp.ne.s32.totalorder %s5553_s12, %s5063_s7  ;;  %p5070_p3 = scmp.lt.u32.totalorder %s5063_s7, %s5553_s12 }
  0x7e   : > { %p5066_p1 = pnand %p5064_p13, %p5659_p0 }
  0x80   : > { %p5067_p2 = pneg %p5066_p1 }
  0x82   : > { %p5072_p4 = pnand %p5070_p3, %p5067_p2 }
  0x84   : > { %5075 = shalt.err (!%p5072_p4)
}
  0x85   : > { %s5076_s23 = scalar_lea.vmem %s845_s1, 32  ;;  %p5084_p10 = scmp.lt.s32.totalorder %s845_s1, %s845_s1 }
  0x86   : > { %p5077_p5 = scmp.ne.s32.totalorder %s845_s1, %s5076_s23  ;;  %p5085_p7 = scmp.lt.s32.totalorder %s5076_s23, %s5076_s23 }
  0x88   : > { %p5079_p6 = pnand %p5077_p5, %p5659_p0  ;;  %p5086_p8 = por %p5085_p7, %p5084_p10 }
  0x8a   : > { %p5080_p9 = pneg %p5079_p6 }
  0x8c   : > { %p5087_p11 = pnand %p5086_p8, %p5080_p9 }
  0x8e   : > { %5090 = shalt.err (!%p5087_p11)
}
  0x8f   : > { %4826 = dma.hbm_to_vmem [thread:$0]  (!%p5647_p12), %s5553_s12, 32, %s845_s1, [#allocation12], %s6231_s22, %s6231_s22, %s5408_s18  }
  0x90   : > { %s5409_s26 = smov [#allocation14]   ;;  %s5410_s19 = smov [#allocation2]  }
  0x91   : > { %s876_s7 = sshll.u32 %s5409_s26, 4  ;;  %s768_s30 = sshll.u32 %s5410_s19, 4  ;;  %s877_s7 = int_to_ptr.vmem [resolvable:$true] %s876_s7  ;;  %s769_s30 = int_to_ptr.vmem [resolvable:$true] %s768_s30 }
  0x92   : > { %s5091_s23 = scalar_lea.hbm %s5573_s6, 32 }
  0x93   : > { %p5092_p13 = scmp.ne.s32.totalorder %s5573_s6, %s5091_s23  ;;  %p5098_p3 = scmp.lt.u32.totalorder %s5091_s23, %s5573_s6 }
  0x95   : > { %p5094_p1 = pnand %p5092_p13, %p5659_p0 }
  0x97   : > { %p5095_p2 = pneg %p5094_p1 }
  0x99   : > { %p5100_p4 = pnand %p5098_p3, %p5095_p2 }
  0x9b   : > { %5103 = shalt.err (!%p5100_p4)
}
  0x9c   : > { %s5104_s15 = scalar_lea.vmem %s877_s7, 32  ;;  %p5112_p10 = scmp.lt.s32.totalorder %s877_s7, %s877_s7 }
  0x9d   : > { %p5105_p5 = scmp.ne.s32.totalorder %s877_s7, %s5104_s15  ;;  %p5113_p7 = scmp.lt.s32.totalorder %s5104_s15, %s5104_s15 }
  0x9f   : > { %p5107_p6 = pnand %p5105_p5, %p5659_p0  ;;  %p5114_p8 = por %p5113_p7, %p5112_p10 }
  0xa1   : > { %p5108_p9 = pneg %p5107_p6 }
  0xa3   : > { %p5115_p11 = pnand %p5114_p8, %p5108_p9 }
  0xa5   : > { %5118 = shalt.err (!%p5115_p11)
}
  0xa6   : > { %4832 = dma.hbm_to_vmem [thread:$0]  (!%p5647_p12), %s5573_s6, 32, %s877_s7, [#allocation15], %s6231_s22, %s6231_s22, %s5408_s18  }
  0xa7   : > { %s5119_s19 = scalar_lea.hbm %s5498_s24, 16 }
  0xa8   : > { %p5120_p13 = scmp.ne.s32.totalorder %s5498_s24, %s5119_s19  ;;  %p5126_p3 = scmp.lt.u32.totalorder %s5119_s19, %s5498_s24 }
  0xaa   : > { %p5122_p1 = pnand %p5120_p13, %p5659_p0 }
  0xac   : > { %p5123_p2 = pneg %p5122_p1 }
  0xae   : > { %p5128_p4 = pnand %p5126_p3, %p5123_p2 }
  0xb0   : > { %5131 = shalt.err (!%p5128_p4)
}
  0xb1   : > { %s5132_s15 = scalar_lea.vmem %s769_s30, 16  ;;  %s5139_s1 = scalar_lea.vmem %s769_s30, 32 }
  0xb2   : > { %p5133_p5 = scmp.ne.s32.totalorder %s769_s30, %s5132_s15  ;;  %p5140_p10 = scmp.lt.s32.totalorder %s769_s30, %s769_s30 }
  0xb3   : > { %p5141_p7 = scmp.lt.s32.totalorder %s5139_s1, %s5132_s15 }
  0xb4   : > { %p5135_p6 = pnand %p5133_p5, %p5659_p0 }
  0xb5   : > { %p5142_p8 = por %p5141_p7, %p5140_p10 }
  0xb6   : > { %p5136_p9 = pneg %p5135_p6 }
  0xb8   : > { %p5143_p11 = pnand %p5142_p8, %p5136_p9 }
  0xba   : > { %5146 = shalt.err (!%p5143_p11)
}
  0xbb   : > { %4811 = dma.hbm_to_vmem [thread:$0]  (!%p5647_p12), %s5498_s24, 16, %s769_s30, [#allocation3]  }
  0xbc   : > { %s5411_s26 = smov [#allocation7]   ;;  %s5412_s23 = smov [#allocation10]  }
  0xbd   : > { %s799_s7 = sshll.u32 %s5411_s26, 4  ;;  %s831_s19 = sshll.u32 %s5412_s23, 4  ;;  %s800_s7 = int_to_ptr.vmem [resolvable:$true] %s799_s7  ;;  %s832_s19 = int_to_ptr.vmem [resolvable:$true] %s831_s19 }
  0xbe   : > { %s5147_s22 = scalar_lea.hbm %s5523_s27, 16 }
  0xbf   : > { %p5148_p13 = scmp.ne.s32.totalorder %s5523_s27, %s5147_s22  ;;  %p5154_p3 = scmp.lt.u32.totalorder %s5147_s22, %s5523_s27 }
  0xc1   : > { %p5150_p1 = pnand %p5148_p13, %p5659_p0 }
  0xc3   : > { %p5151_p2 = pneg %p5150_p1 }
  0xc5   : > { %p5156_p4 = pnand %p5154_p3, %p5151_p2 }
  0xc7   : > { %5159 = shalt.err (!%p5156_p4)
}
  0xc8   : > { %s5160_s15 = scalar_lea.vmem %s800_s7, 16  ;;  %s5167_s30 = scalar_lea.vmem %s800_s7, 32 }
  0xc9   : > { %p5161_p5 = scmp.ne.s32.totalorder %s800_s7, %s5160_s15  ;;  %p5168_p10 = scmp.lt.s32.totalorder %s800_s7, %s800_s7 }
  0xca   : > { %p5169_p7 = scmp.lt.s32.totalorder %s5167_s30, %s5160_s15 }
  0xcb   : > { %p5163_p6 = pnand %p5161_p5, %p5659_p0 }
  0xcc   : > { %p5170_p8 = por %p5169_p7, %p5168_p10 }
  0xcd   : > { %p5164_p9 = pneg %p5163_p6 }
  0xcf   : > { %p5171_p11 = pnand %p5170_p8, %p5164_p9 }
  0xd1   : > { %5174 = shalt.err (!%p5171_p11)
}
  0xd2   : > { %4817 = dma.hbm_to_vmem [thread:$0]  (!%p5647_p12), %s5523_s27, 16, %s800_s7, [#allocation6]  }
  0xd3   : > { %s5175_s22 = scalar_lea.hbm %s6264_s4, 32 }
  0xd4   : > { %p5176_p13 = scmp.ne.s32.totalorder %s6264_s4, %s5175_s22  ;;  %p5182_p3 = scmp.lt.u32.totalorder %s5175_s22, %s6264_s4 }
  0xd6   : > { %p5178_p1 = pnand %p5176_p13, %p5659_p0 }
  0xd8   : > { %p5179_p2 = pneg %p5178_p1 }
  0xda   : > { %p5184_p4 = pnand %p5182_p3, %p5179_p2 }
  0xdc   : > { %5187 = shalt.err (!%p5184_p4)
}
  0xdd   : > { %s5188_s1 = scalar_lea.vmem %s832_s19, 32  ;;  %p5196_p10 = scmp.lt.s32.totalorder %s832_s19, %s832_s19 }
  0xde   : > { %p5189_p5 = scmp.ne.s32.totalorder %s832_s19, %s5188_s1  ;;  %p5197_p7 = scmp.lt.s32.totalorder %s5188_s1, %s5188_s1 }
  0xe0   : > { %p5191_p6 = pnand %p5189_p5, %p5659_p0  ;;  %p5198_p8 = por %p5197_p7, %p5196_p10 }
  0xe2   : > { %p5192_p9 = pneg %p5191_p6 }
  0xe4   : > { %p5199_p11 = pnand %p5198_p8, %p5192_p9 }
  0xe6   : > { %5202 = shalt.err (!%p5199_p11)
}
  0xe7   : > { %s6279_s26 = smov 16   ;;  %s5413_s7 = smov [#allocation13]  }
  0xe8   : > { %4823 = dma.hbm_to_vmem [thread:$0]  (!%p5647_p12), %s6264_s4, 32, %s832_s19, [#allocation9], %s6279_s26, %s6279_s26, %s5408_s18  }
  0xe9   : > { %s860_s23 = sshll.u32 %s5413_s7, 4  ;;  %s5414_s15 = smov [#allocation16]   ;;  %s861_s23 = int_to_ptr.vmem [resolvable:$true] %s860_s23 }
  0xea   : > { %s889_s30 = sshll.u32 %s5414_s15, 4  ;;  %s5203_s22 = scalar_lea.hbm %s5563_s14, 32  ;;  %s890_s30 = int_to_ptr.vmem [resolvable:$true] %s889_s30 }
  0xeb   : > { %p5204_p13 = scmp.ne.s32.totalorder %s5563_s14, %s5203_s22  ;;  %p5210_p3 = scmp.lt.u32.totalorder %s5203_s22, %s5563_s14 }
  0xed   : > { %p5206_p1 = pnand %p5204_p13, %p5659_p0 }
  0xef   : > { %p5207_p2 = pneg %p5206_p1 }
  0xf1   : > { %p5212_p4 = pnand %p5210_p3, %p5207_p2 }
  0xf3   : > { %5215 = shalt.err (!%p5212_p4)
}
  0xf4   : > { %s5216_s1 = scalar_lea.vmem %s861_s23, 32  ;;  %p5224_p10 = scmp.lt.s32.totalorder %s861_s23, %s861_s23 }
  0xf5   : > { %p5217_p5 = scmp.ne.s32.totalorder %s861_s23, %s5216_s1  ;;  %p5225_p7 = scmp.lt.s32.totalorder %s5216_s1, %s5216_s1 }
  0xf7   : > { %p5219_p6 = pnand %p5217_p5, %p5659_p0  ;;  %p5226_p8 = por %p5225_p7, %p5224_p10 }
  0xf9   : > { %p5220_p9 = pneg %p5219_p6 }
  0xfb   : > { %p5227_p11 = pnand %p5226_p8, %p5220_p9 }
  0xfd   : > { %5230 = shalt.err (!%p5227_p11)
}
  0xfe   : > { %4829 = dma.hbm_to_vmem [thread:$0]  (!%p5647_p12), %s5563_s14, 32, %s861_s23, [#allocation12], %s6279_s26, %s6279_s26, %s5408_s18  }
  0xff   : > { %s5231_s19 = scalar_lea.hbm %s5578_s20, 32 }
 0x100   : > { %p5232_p13 = scmp.ne.s32.totalorder %s5578_s20, %s5231_s19  ;;  %p5238_p3 = scmp.lt.u32.totalorder %s5231_s19, %s5578_s20 }
 0x102   : > { %p5234_p1 = pnand %p5232_p13, %p5659_p0 }
 0x104   : > { %p5235_p2 = pneg %p5234_p1 }
 0x106   : > { %p5240_p4 = pnand %p5238_p3, %p5235_p2 }
 0x108   : > { %5243 = shalt.err (!%p5240_p4)
}
 0x109   : > { %s5244_s7 = scalar_lea.vmem %s890_s30, 32  ;;  %p5252_p10 = scmp.lt.s32.totalorder %s890_s30, %s890_s30 }
 0x10a   : > { %p5245_p5 = scmp.ne.s32.totalorder %s890_s30, %s5244_s7  ;;  %p5253_p7 = scmp.lt.s32.totalorder %s5244_s7, %s5244_s7 }
 0x10c   : > { %p5247_p6 = pnand %p5245_p5, %p5659_p0  ;;  %p5254_p8 = por %p5253_p7, %p5252_p10 }
 0x10e   : > { %p5248_p9 = pneg %p5247_p6 }
 0x110   : > { %p5255_p11 = pnand %p5254_p8, %p5248_p9 }
 0x112   : > { %5258 = shalt.err (!%p5255_p11)
}
 0x113   : > { %4835 = dma.hbm_to_vmem [thread:$0]  (!%p5647_p12), %s5578_s20, 32, %s890_s30, [#allocation15], %s6279_s26, %s6279_s26, %s5408_s18  }
 0x114   : > { %s5415_s23 = smov [#allocation17]   ;;  %s5259_s22 = scalar_lea.hbm %s6265_s3, 32 }
 0x115   : > { %s902_s15 = sshll.u32 %s5415_s23, 4  ;;  %p5260_p13 = scmp.ne.s32.totalorder %s6265_s3, %s5259_s22  ;;  %s903_s15 = int_to_ptr.vmem [resolvable:$true] %s902_s15 }
 0x116   : > { %p5266_p3 = scmp.lt.u32.totalorder %s5259_s22, %s6265_s3 }
 0x117   : > { %p5262_p1 = pnand %p5260_p13, %p5659_p0 }
 0x119   : > { %p5263_p2 = pneg %p5262_p1 }
 0x11b   : > { %p5268_p4 = pnand %p5266_p3, %p5263_p2 }
 0x11d   : > { %5271 = shalt.err (!%p5268_p4)
}
 0x11e   : > { %s5272_s1 = scalar_lea.vmem %s903_s15, 32  ;;  %p5280_p10 = scmp.lt.s32.totalorder %s903_s15, %s903_s15 }
 0x11f   : > { %p5273_p5 = scmp.ne.s32.totalorder %s903_s15, %s5272_s1  ;;  %p5281_p7 = scmp.lt.s32.totalorder %s5272_s1, %s5272_s1 }
 0x121   : > { %p5275_p6 = pnand %p5273_p5, %p5659_p0  ;;  %p5282_p8 = por %p5281_p7, %p5280_p10 }
 0x123   : > { %p5276_p9 = pneg %p5275_p6 }
 0x125   : > { %p5283_p11 = pnand %p5282_p8, %p5276_p9 }
 0x127   : > { %5286 = shalt.err (!%p5283_p11)
}
 0x128   : > { %4838 = dma.hbm_to_vmem [thread:$0]  (!%p5647_p12), %s6265_s3, 32, %s903_s15, [#allocation18], %s6279_s26, %s6279_s26, %s5408_s18  }
 0x129   : > { %p6280_p13 = scmp.ne.s32.totalorder %s6276_s2, 0 }
 0x12a   : > { %p6281_p1 = scmp.eq.s32.totalorder (!%p6280_p13), %s5611_s0, 0 }
 0x12b   : > { %931 = sbr.rel (%p6280_p13) target bundleno = 7036 (0x1b7c), region = 136 }
 0x132   : > { %5332 = dma.done.wait (%p6281_p1), [#allocation3], 16   ;;  %p6282_p0 = pmov %p6281_p1 }
 0x134   : > { %5334 = vsyncadd (%p6282_p0), [#allocation3], 4294967280  ;;  %p6283_p2 = pmov %p6282_p0 }
 0x135   : > { %p6284_p3 = pmov %p6282_p0 }
 0x136   : > { %5336 = dma.done.wait (%p6283_p2), [#allocation6], 32  }
 0x137   : > { %5338 = vsyncadd (%p6284_p3), [#allocation6], 4294967264  ;;  %p6285_p4 = pmov %p6282_p0 }
 0x138   : > { %p6286_p12 = pmov %p6282_p0 }
 0x139   : > { %5340 = dma.done.wait (%p6285_p4), [#allocation9], 64  }
 0x13a   : > { %5342 = vsyncadd (%p6286_p12), [#allocation9], 4294967232  ;;  %p6287_p5 = pmov %p6282_p0 }
 0x13b   : > { %p6288_p6 = pmov %p6282_p0 }
 0x13c   : > { %5344 = dma.done.wait (%p6287_p5), [#allocation12], 64  }
 0x13d   : > { %5346 = vsyncadd (%p6288_p6), [#allocation12], 4294967232  ;;  %p6289_p9 = pmov %p6282_p0 }
 0x13e   : > { %p6290_p10 = pmov %p6282_p0 }
 0x13f   : > { %5348 = dma.done.wait (%p6289_p9), [#allocation15], 64  }
 0x140   : > { %5350 = vsyncadd (%p6290_p10), [#allocation15], 4294967232  ;;  %p6291_p7 = pmov %p6282_p0 }
 0x141   : > { %p6292_p8 = pmov %p6282_p0 }
 0x142   : > { %5352 = dma.done.wait (%p6291_p7), [#allocation18], 32  }
 0x143   : > { %5354 = vsyncadd (%p6292_p8), [#allocation18], 4294967264  ;;  %p1045_p11 = scmp.lt.s32.totalorder %s5611_s0, 1  ;;  %v5416_v0 = vmov 0.0   ;;  %vm5417_vm0 = vmmov 0   ;;  %vm1056_vm1 = vcmask 64512   ;;  %v1386_v39 = vlaneseq }
 0x144   : > { %4382 = vmatprep.subr.mxu0 %v5416_v0  ;;  %4384 = vmatprep.mubr.msk.f32.mxu0 %vm5417_vm0, %v5416_v0  ;;  %v1054_v1 = vld [vmem:[%s5453_s13] sm:$0xff]  ;;  %v1138_v4 = vld [vmem:[%s5463_s21 + $0x8] sm:$0xff]  ;;  %v5418_v6 = vmov 0.0|0.0   ;;  %v1139_v7 = vld [vmem:[%s5463_s21 + $0x10] sm:$0xff]  ;;  %vm1142_vm2 = vcmask 261120   ;;  %vm1225_vm3 = vcmask 130048  }
 0x145   : > { %s5819_s11 = scalar_select %p1045_p11, %s5611_s0, 1  ;;  %4423 = vmatprep.subr.mxu1 %v5416_v0  ;;  %4425 = vmatprep.mubr.msk.f32.mxu1 %vm5417_vm0, %v5416_v0  ;;  %v1137_v3 = vld [vmem:[%s5463_s21] sm:$0xff]  ;;  %v1140_v8 = vld [vmem:[%s5463_s21 + $0x18] sm:$0xff]  ;;  %v1217_v18 = vld [vmem:[%s5473_s29 + $0x8] sm:$0xff]  ;;  %v1387_v40 = vshrl.u32 %v1386_v39, 7  ;;  %v5868_v49 = vand.u32 127, %v1386_v39 }
 0x146   : > { %4383 = vmatpush3.msra.mxu0 %v1054_v1  ;;  %v4659_v5 = vpack.c.bf16 %v1138_v4, %v1137_v3  ;;  %v4662_v9 = vpack.c.bf16 %v1140_v8, %v1139_v7  ;;  %v1055_v10 = vld [vmem:[%s5458_s17] sm:$0x1]  ;;  %s6293_s26 = sld [smem:[#allocation28_spill]]  ;;  %v1301_v24 = vld [vmem:[%s5483_s8 + $0x8] sm:$0xff]  ;;  %s6294_s30 = sld [smem:[#allocation32_spill]]  ;;  %v1302_v25 = vld [vmem:[%s5483_s8 + $0x10] sm:$0xff] }
 0x147   : > { %s1051_s2 = scalar_lea.vmem %s5448_s9, %s5819_s11  ;;  %4658 = vmatprep.subr.bf16.mxu0 %v5418_v6  ;;  %v1216_v17 = vld [vmem:[%s5473_s29] sm:$0xff]  ;;  %s4171_s16 = sshll.u32 %s5819_s11, 3  ;;  %v1303_v27 = vld [vmem:[%s5483_s8 + $0x18] sm:$0xff]  ;;  %v1388_v44 = vsub.s32 0, %v1387_v40  ;;  %vm1495_vm4 = vcmp.lt.s32.totalorder %v5868_v49, 50  ;;  %v1499_v63 = vcvt.s32.f32 %v5868_v49  ;;  %vm1507_vm6 = vcmask 7168  }
 0x148   : > { %v1053_v2 = vld [vmem:[%s1051_s2] sm:$0x1]  ;;  %v4665_v20 = vpack.c.bf16 %v1217_v18, %v1216_v17  ;;  %s1048_s18 = scalar_lea.vmem %s5443_s5, %s4171_s16  ;;  %v4671_v28 = vpack.c.bf16 %v1303_v27, %v1302_v25  ;;  %s6295_s19 = sld [smem:[#allocation27_spill]]  ;;  %v4180_v17 = vld [vmem:[#allocation5] ss:$0 sm:$0xff]  ;;  %vm2347_vm8 = vcmask 195584  }
 0x149   : > { %4385 = vmatmul.mubr.msk.f32.vlgmr.msra.gmra.mrb[0].mxu0 %vm1056_vm1, %v1053_v2  ;;  %v1052_v22 = vld [vmem:[%s1048_s18] sm:$0xff]  ;;  %s6296_s7 = sld [smem:[#allocation29_spill]]  ;;  %s6297_s23 = sld [smem:[#allocation30_spill]]  ;;  %vm2563_vm9 = vcmask 523264  }
 0x14a   : > { %4395 = vmatprep.mubr.msk.f32.mxu0 %vm5417_vm0, %v5416_v0  ;;  %4660 = vmatpush3.bf16.msra.mxu0 %v4659_v5  ;;  %v1300_v23 = vld [vmem:[%s5483_s8] sm:$0xff]  ;;  %s6298_s15 = sld [smem:[#allocation35_spill]]  ;;  %s6300_s1 = sld [smem:[#allocation36_spill]] }
 0x14b   : > { %4661 = vmatprep.subr.bf16.mxu0 %v5418_v6  ;;  %v4668_v26 = vpack.c.bf16 %v1301_v24, %v1300_v23  ;;  %v5419_v23 = vmov 1.0   ;;  %s5420_s11 = smov 88   ;;  %s5421_s2 = smov 96  }
 0x14c   : > { %v4175_v31 = vld [vmem:[%s6293_s26] ss:$0 sm:$0xff]  ;;  %v1422_v36 = vld [vmem:[%s6294_s30 + $0x8] sm:$0xff]  ;;  %s5422_s16 = smov 112   ;;  %s5423_s18 = smov 120  }
 0x14d   : > { %v1421_v35 = vld [vmem:[%s6294_s30] sm:$0xff]  ;;  %s6240_s26 = smov 104   ;;  %p6319_p1 = scmp.ne.s32.totalorder %s6273_s28, 0 }
 0x14e   : > { %4663 = vmatpush3.bf16.msra.mxu0 %v4662_v9  ;;  %v4674_v37 = vpack.c.bf16 %v1422_v36, %v1421_v35  ;;  %v1141_v41 = vld [vmem:[%s6295_s19] sm:$0x1]  ;;  %s6238_s19 = smov 80  }
 0x14f   : > { %4664 = vmatprep.subr.bf16.mxu0 %v5418_v6  ;;  %v4177_v42 = vld [vmem:[%s6296_s7] ss:$0 sm:$0xff]  ;;  %s6234_s7 = smov 72  }
 0x150   : > { %v1384_v46 = vld [vmem:[%s6297_s23] sm:$0xff]  ;;  %s6299_s22 = smov %s6298_s15  ;;  %s6233_s23 = smov 64  }
 0x151   : > { %v1588_v2 = vld [vmem:[%s6298_s15] sm:$0xff]  ;;  %v1589_v3 = vld [vmem:[%s6299_s22 + $0x8] sm:$0xff]  ;;  %v1590_v5 = vld [vmem:[%s6299_s22 + $0x10] sm:$0xff]  ;;  %s6237_s15 = smov 48  }
 0x152   : > { %v4677_v4 = vpack.c.bf16 %v1589_v3, %v1588_v2  ;;  %v1591_v7 = vld [vmem:[%s6299_s22 + $0x18] sm:$0xff]  ;;  %v4185_v24 = vld [vmem:[%s6300_s1] ss:$0 sm:$0xff] }
 0x153   : > { %v4680_v8 = vpack.c.bf16 %v1591_v7, %v1590_v5 }
 0x21c   : > { %v1126_v11 = vpop.f32.mrb[0].mxu0 }
 0x21d   : > { %v1127_v12 = vadd.f32 %v1126_v11, %v1055_v10  ;;  %v4386_v13 = vpop.f32.mrb[1].mxu0 }
 0x21f   : > { %v4173_v14 = vmul.f32 -1.442695, %v1127_v12 }
 0x221   : > { %4955 = vpow2.f32 %v4173_v14 }
 0x22b   : > { %v4956_v15 = vpop.eup %4955 }
 0x22c   : > { %v1133_v16 = vadd.f32 1.0, %v4956_v15  ;;  %v4179_v15 = vld [vmem:[#allocation2] ss:$0 sm:$0xff] }
 0x22e   : > { %4957 = vrcp.f32 %v1133_v16 }
 0x238   : > { %v4958_v19 = vpop.eup %4957 }
 0x239   : > { %v1136_v21 = vmul.f32 %v4958_v19, %v1127_v12 }
 0x23b   : > { %4396 = vmatmul.mubr.msk.f32.vlgmr.msra.gmra.mrb[2].mxu0 %vm1142_vm2, %v1136_v21 }
 0x23c   : > { %4666 = vmatpush3.bf16.msra.mxu0 %v4665_v20  ;;  %4402 = vmatprep.mubr.msk.f32.mxu0 %vm5417_vm0, %v5416_v0 }
 0x23d   : > { %4667 = vmatprep.subr.bf16.mxu0 %v5418_v6 }
 0x23f   : > { %4403 = vmatmul.mubr.msk.f32.vlgmr.msra.gmra.mrb[4].mxu0 %vm1225_vm3, %v1052_v22 }
 0x240   : > { %4413 = vmatprep.mubr.msk.f32.mxu0 %vm5417_vm0, %v5416_v0  ;;  %4669 = vmatpush3.bf16.msra.mxu0 %v4668_v26 }
 0x241   : > { %4670 = vmatprep.subr.bf16.mxu0 %v5418_v6 }
 0x244   : > { %4672 = vmatpush3.bf16.msra.mxu0 %v4671_v28 }
 0x245   : > { %4673 = vmatprep.subr.bf16.mxu0 %v5418_v6 }
 0x30e   : > { %v1212_v29 = vpop.f32.mrb[2].mxu0 }
 0x30f   : > { %v4397_v30 = vpop.f32.mrb[3].mxu0  ;;  %v1213_v43 = vadd.f32 %v1212_v29, %v1141_v41 }
 0x311   : > { %v1389_v50 = vrot.slane %v1213_v43, %v1388_v44 }
 0x312   : > { %v1295_v32 = vpop.f32.mrb[4].mxu0 }
 0x313   : > { %v1296_v33 = vadd.f32 %v4175_v31, %v1295_v32  ;;  %v4404_v34 = vpop.f32.mrb[5].mxu0 }
 0x315   : > { %4959 = vtanh.f32 %v1296_v33 }
 0x31f   : > { %v4960_v38 = vpop.eup %4959 }
 0x320   : > { %4414 = vmatmul.mubr.msk.f32.vlgmr.msra.gmra.mrb[6].mxu0 %vm1142_vm2, %v4960_v38 }
 0x321   : > { %4675 = vmatpush3.bf16.msra.mxu0 %v4674_v37  ;;  %4420 = vmatprep.mubr.msk.f32.mxu0 %vm5417_vm0, %v5416_v0 }
 0x322   : > { %4676 = vmatprep.subr.bf16.mxu0 %v5418_v6 }
 0x324   : > { %4421 = vmatmul.mubr.msk.f32.vlgmr.msra.gmra.mrb[8].mxu0 %vm1225_vm3, %v1052_v22 }
 0x325   : > { %4436 = vmatprep.mubr.msk.f32.mxu0 %vm5417_vm0, %v5416_v0  ;;  %4678 = vmatpush3.bf16.msra.mxu0 %v4677_v4 }
 0x326   : > { %4679 = vmatprep.subr.bf16.mxu0 %v5418_v6 }
 0x329   : > { %4681 = vmatpush3.bf16.msra.mxu0 %v4680_v8 }
 0x32a   : > { %4449 = vmatprep.subr.mxu0 %v5416_v0 }
 0x3f3   : > { %v1380_v45 = vpop.f32.mrb[6].mxu0 }
 0x3f4   : > { %v1381_v47 = vadd.f32 %v4177_v42, %v1380_v45  ;;  %v4415_v48 = vpop.f32.mrb[7].mxu0 }
 0x3f6   : > { %v1385_v51 = vadd.f32 %v1384_v46, %v1381_v47 }
 0x3f7   : > { %v1489_v52 = vpop.f32.mrb[8].mxu0 }
 0x3f8   : > { %v1390_v53 = vadd.f32 %v1389_v50, %v1385_v51  ;;  %v4422_v54 = vpop.f32.mrb[9].mxu0  ;;  %v1496_v56 = vsel %vm1495_vm4, %v1489_v52, -1e+30 }
 0x3fa   : > { %v1393_v55 = vsel %vm1142_vm2, %v1390_v53, 0.0 }
 0x3fb   : > { %1394 = vadd.xlane.f32.xlu0 %v1393_v55 }
 0x3ff   : > { %1497 = vmax.xlane.f32.xlu0 %v1496_v56 }
 0x488   : > { %v1395_v57 = vpop.xlane.xlu0 %1394 }
 0x489   : > { %v1397_v58 = vmul.f32 0.03125, %v1395_v57 }
 0x48b   : > { %v1398_v59 = vsub.f32 %v1390_v53, %v1397_v58 }
 0x48c   : > { %v1498_v60 = vpop.xlane.xlu0 %1497 }
 0x48d   : > { %v1399_v61 = vmul.f32 %v1398_v59, %v1398_v59  ;;  %vm1500_vm5 = vcmp.ge.f32.partialorder %v1496_v56, %v1498_v60 }
 0x48e   : > { %v1501_v1 = vsel %vm1500_vm5, %v1499_v63, 128.0 }
 0x48f   : > { %v1400_v62 = vsel %vm1142_vm2, %v1399_v61, 0.0 }
 0x490   : > { %1401 = vadd.xlane.f32.xlu1 %v1400_v62 }
 0x494   : > { %1502 = vmin.xlane.f32.xlu1 %v1501_v1 }
 0x51d   : > { %v1402_v9 = vpop.xlane.xlu1 %1401 }
 0x51e   : > { %v1403_v10 = vmul.f32 0.03125, %v1402_v9 }
 0x520   : > { %v1404_v11 = vadd.f32 1e-05, %v1403_v10 }
 0x521   : > { %v1503_v12 = vpop.xlane.xlu1 %1502 }
 0x522   : > { %4961 = vrsqrt.f32 %v1404_v11  ;;  %vm1504_vm7 = vcmp.eq.f32.partialorder %v1503_v12, 1.0 }
 0x523   : > { %v4182_v13 = vsel %vm1504_vm7, 1.0, %v5416_v0 }
 0x524   : > { %4424 = vmatpush3.xpose.msk.msra.mxu1 %vm1507_vm6, %v4182_v13  ;;  %v1586_v21 = vsub.f32 1.0, %v4182_v13 }
 0x525   : > { %4439 = vmatprep.subr.mxu1 %v5416_v0 }
 0x527   : > { %4426 = vmatmul.mubr.msk.f32.vlgmr.msra.gmra.mrb[0].mxu1 %vm1507_vm6, %v5419_v23 }
 0x528   : > { %4441 = vmatprep.mubr.msk.f32.mxu1 %vm5417_vm0, %v5416_v0 }
 0x52c   : > { %v4962_v14 = vpop.eup %4961 }
 0x52d   : > { %v1406_v16 = vmul.f32 %v4962_v14, %v1398_v59 }
 0x52f   : > { %v1413_v18 = vmul.f32 %v4179_v15, %v1406_v16 }
 0x531   : > { %v1420_v19 = vadd.f32 %v4180_v17, %v1413_v18 }
 0x533   : > { %v1585_v20 = vmul.f32 5.656854, %v1420_v19 }
 0x535   : > { %v5885_v22 = vmul.f32 %v1586_v21, %v1585_v20 }
 0x537   : > { %4437 = vmatmul.mubr.msk.f32.vlgmr.msra.gmra.mrb[10].mxu0 %vm1142_vm2, %v5885_v22 }
 0x538   : > { %4451 = vmatprep.mubr.msk.f32.mxu0 %vm5417_vm0, %v5416_v0 }
 0x5fa   : > { %v1580_v29 = vpop.f32.mrb[0].mxu1 }
 0x5fb   : > { %v4427_v30 = vpop.f32.mrb[1].mxu1  ;;  %v5929_v38 = vmul.f32 -1e+30, %v1580_v29 }
 0x60a   : > { %v1668_v25 = vpop.f32.mrb[10].mxu0 }
 0x60b   : > { %v5895_v26 = vadd.f32 %v4185_v24, %v1668_v25  ;;  %v4438_v27 = vpop.f32.mrb[11].mxu0 }
 0x60d   : > { %1840 = vrot.lane.b32.xlu1 %v5895_v26, %s5420_s11  ;;  %1674 = vrot.lane.b32.xlu0 %v5895_v26, %s5421_s2  ;;  %v1672_v28 = vmul.f32 0.35355338, %v5895_v26 }
 0x611   : > { %2003 = vrot.lane.b32.xlu0 %v1672_v28, %s5422_s16  ;;  %1838 = vrot.lane.b32.xlu1 %v1672_v28, %s5423_s18 }
 0x615   : > { %2168 = vrot.lane.b32.xlu0 %v1672_v28, %s6240_s26  ;;  %2005 = vrot.lane.b32.xlu1 %v5895_v26, %s6238_s19  ;;  %s6241_s19 = smov 24  }
 0x619   : > { %2170 = vrot.lane.b32.xlu1 %v5895_v26, %s6234_s7  ;;  %s6235_s7 = smov 56  }
 0x67f   : > { %v1841_v31 = vpop.permute.xlu1 %1840  ;;  %v1675_v32 = vpop.permute.xlu0 %1674 }
 0x680   : > { %4440 = vmatpush3.xpose.msk.msra.mxu1 %vm1056_vm1, %v1675_v32  ;;  %4450 = vmatpush3.xpose.msk.msra.mxu0 %vm1056_vm1, %v1841_v31 }
 0x681   : > { %4459 = vmatprep.subr.mxu0 %v5416_v0  ;;  %4444 = vmatprep.subr.mxu1 %v5416_v0 }
 0x683   : > { %v1839_v33 = vpop.permute.xlu1 %1838  ;;  %4442 = vmatmul.mubr.msk.f32.vlgmr.msra.gmra.mrb[2].mxu1 %vm1056_vm1, %v1672_v28  ;;  %v2004_v35 = vpop.permute.xlu0 %2003 }
 0x684   : > { %4452 = vmatmul.mubr.msk.f32.vlgmr.msra.gmra.mrb[12].mxu0 %vm1056_vm1, %v1839_v33  ;;  %4446 = vmatprep.mubr.msk.f32.mxu1 %vm5417_vm0, %v5416_v0 }
 0x685   : > { %4461 = vmatprep.mubr.msk.f32.mxu0 %vm5417_vm0, %v5416_v0 }
 0x687   : > { %v2006_v34 = vpop.permute.xlu1 %2005  ;;  %v2169_v37 = vpop.permute.xlu0 %2168 }
 0x688   : > { %4460 = vmatpush3.xpose.msk.msra.mxu0 %vm1056_vm1, %v2006_v34 }
 0x689   : > { %4469 = vmatprep.subr.mxu0 %v5416_v0 }
 0x68b   : > { %4462 = vmatmul.mubr.msk.f32.vlgmr.msra.gmra.mrb[14].mxu0 %vm1056_vm1, %v2004_v35  ;;  %v2171_v36 = vpop.permute.xlu1 %2170 }
 0x68c   : > { %4470 = vmatpush3.xpose.msk.msra.mxu0 %vm1056_vm1, %v2171_v36  ;;  %4471 = vmatprep.mubr.msk.f32.mxu0 %vm5417_vm0, %v5416_v0 }
 0x68d   : > { %4682 = vmatprep.subr.bf16.mxu0 %v5418_v6 }
 0x68f   : > { %4472 = vmatmul.mubr.msk.f32.vlgmr.msra.gmra.mrb[16].mxu0 %vm1056_vm1, %v2169_v37 }
 0x690   : > { %4487 = vmatprep.mubr.msk.f32.mxu0 %vm5417_vm0, %v5416_v0 }
 0x756   : > { %v1747_v39 = vpop.f32.mrb[2].mxu1 }
 0x757   : > { %v1748_v40 = vadd.f32 %v1747_v39, %v5929_v38  ;;  %v4443_v41 = vpop.f32.mrb[3].mxu1  ;;  %v1912_v42 = vpop.f32.mrb[12].mxu0 }
 0x758   : > { %v1913_v43 = vadd.f32 %v1912_v42, %v5929_v38  ;;  %v4453_v44 = vpop.f32.mrb[13].mxu0 }
 0x759   : > { %v1751_v45 = vsel %vm1056_vm1, %v1748_v40, -inf }
 0x75a   : > { %1752 = vmax.xlane.f32.xlu1 %v1751_v45  ;;  %v1916_v46 = vsel %vm1056_vm1, %v1913_v43, -inf }
 0x75b   : > { %1917 = vmax.xlane.f32.xlu0 %v1916_v46 }
 0x75e   : > { %v2077_v47 = vpop.f32.mrb[14].mxu0 }
 0x75f   : > { %v2078_v48 = vadd.f32 %v2077_v47, %v5929_v38  ;;  %v4463_v50 = vpop.f32.mrb[15].mxu0 }
 0x761   : > { %v2081_v51 = vsel %vm1056_vm1, %v2078_v48, -inf }
 0x762   : > { %2082 = vmax.xlane.f32.xlu0 %v2081_v51  ;;  %v2242_v52 = vpop.f32.mrb[16].mxu0 }
 0x763   : > { %v2243_v53 = vadd.f32 %v2242_v52, %v5929_v38  ;;  %v4473_v54 = vpop.f32.mrb[17].mxu0 }
 0x765   : > { %v2246_v55 = vsel %vm1056_vm1, %v2243_v53, -inf }
 0x766   : > { %2247 = vmax.xlane.f32.xlu0 %v2246_v55 }
 0x76b   : > { %1762 = vrot.lane.b32.xlu1 %v5895_v26, %s6233_s23  ;;  %s6236_s23 = smov 40  }
 0x7e7   : > { %v1753_v56 = vpop.xlane.xlu1 %1752 }
 0x7e8   : > { %v1754_v57 = vsub.f32 %v1748_v40, %v1753_v56  ;;  %v1918_v58 = vpop.xlane.xlu0 %1917 }
 0x7e9   : > { %v1919_v59 = vsub.f32 %v1913_v43, %v1918_v58 }
 0x7ea   : > { %v1755_v60 = vmul.f32 1.442695, %v1754_v57 }
 0x7eb   : > { %v1920_v61 = vmul.f32 1.442695, %v1919_v59  ;;  %v1763_v62 = vpop.permute.xlu1 %1762 }
 0x7ec   : > { %4963 = vpow2.f32 %v1755_v60  ;;  %4445 = vmatpush3.msra.mxu1 %v1763_v62 }
 0x7ed   : > { %4965 = vpow2.f32 %v1920_v61  ;;  %4454 = vmatprep.subr.mxu1 %v5416_v0 }
 0x7ef   : > { %v2083_v63 = vpop.xlane.xlu0 %2082 }
 0x7f0   : > { %v2084_v1 = vsub.f32 %v2078_v48, %v2083_v63 }
 0x7f2   : > { %v2085_v2 = vmul.f32 1.442695, %v2084_v1 }
 0x7f3   : > { %v2248_v3 = vpop.xlane.xlu0 %2247 }
 0x7f4   : > { %4967 = vpow2.f32 %v2085_v2  ;;  %v2249_v4 = vsub.f32 %v2243_v53, %v2248_v3  ;;  %v4199_v53 = vld [vmem:[#allocation8] ss:$0 sm:$0xff] }
 0x7f6   : > { %v4964_v5 = vpop.eup %4963  ;;  %v2250_v7 = vmul.f32 1.442695, %v2249_v4 }
 0x7f7   : > { %v4966_v8 = vpop.eup %4965  ;;  %v1757_v9 = vsel %vm1056_vm1, %v4964_v5, 0.0 }
 0x7f8   : > { %4969 = vpow2.f32 %v2250_v7  ;;  %1758 = vadd.xlane.f32.xlu1 %v1757_v9  ;;  %v1922_v10 = vsel %vm1056_vm1, %v4966_v8, 0.0 }
 0x7f9   : > { %1923 = vadd.xlane.f32.xlu0 %v1922_v10 }
 0x7fe   : > { %v4968_v11 = vpop.eup %4967 }
 0x7ff   : > { %v2087_v12 = vsel %vm1056_vm1, %v4968_v11, 0.0 }
 0x800   : > { %2088 = vadd.xlane.f32.xlu1 %v2087_v12 }
 0x802   : > { %v4970_v13 = vpop.eup %4969 }
 0x803   : > { %v2252_v14 = vsel %vm1056_vm1, %v4970_v13, 0.0 }
 0x804   : > { %2253 = vadd.xlane.f32.xlu0 %v2252_v14 }
 0x811   : > { %2092 = vrot.lane.b32.xlu1 %v5895_v26, %s6237_s15  ;;  %s6239_s15 = smov 8  }
 0x815   : > { %2257 = vrot.lane.b32.xlu1 %v5895_v26, %s6236_s23 }
 0x81a   : > { %1927 = vrot.lane.b32.xlu0 %v5895_v26, %s6235_s7  ;;  %s6301_s7 = sld [smem:[#allocation37_spill]] }
 0x820   : > { %s6302_s23 = smov %s6301_s7  ;;  %v2349_v31 = vld [vmem:[%s6301_s7] sm:$0xff]  ;;  %s6242_s7 = smov 16  }
 0x821   : > { %v2350_v32 = vld [vmem:[%s6302_s23 + $0x8] sm:$0xff]  ;;  %v2351_v34 = vld [vmem:[%s6302_s23 + $0x10] sm:$0xff]  ;;  %v2352_v35 = vld [vmem:[%s6302_s23 + $0x18] sm:$0xff] }
 0x822   : > { %v4683_v33 = vpack.c.bf16 %v2350_v32, %v2349_v31  ;;  %v4686_v36 = vpack.c.bf16 %v2352_v35, %v2351_v34  ;;  %v4205_v34 = vld [vmem:[#allocation14] ss:$0 sm:$0xff] }
 0x824   : > { %4684 = vmatpush3.bf16.msra.mxu0 %v4683_v33 }
 0x825   : > { %4685 = vmatprep.subr.bf16.mxu0 %v5418_v6 }
 0x828   : > { %4687 = vmatpush3.bf16.msra.mxu0 %v4686_v36 }
 0x829   : > { %4694 = vmatprep.subr.bf16.mxu0 %v5418_v6 }
 0x885   : > { %v1759_v15 = vpop.xlane.xlu1 %1758 }
 0x886   : > { %4971 = vrcp.f32 %v1759_v15  ;;  %v1924_v16 = vpop.xlane.xlu0 %1923 }
 0x887   : > { %4973 = vrcp.f32 %v1924_v16 }
 0x88d   : > { %v2089_v17 = vpop.xlane.xlu1 %2088 }
 0x88e   : > { %4975 = vrcp.f32 %v2089_v17 }
 0x890   : > { %v4972_v18 = vpop.eup %4971 }
 0x891   : > { %v1761_v19 = vmul.f32 %v4972_v18, %v4964_v5  ;;  %v2254_v20 = vpop.xlane.xlu0 %2253  ;;  %v4974_v21 = vpop.eup %4973 }
 0x892   : > { %4977 = vrcp.f32 %v2254_v20  ;;  %v1926_v23 = vmul.f32 %v4974_v21, %v4966_v8  ;;  %v2093_v24 = vpop.permute.xlu1 %2092  ;;  %v4201_v20 = vld [vmem:[#allocation10] ss:$0 sm:$0xff] }
 0x893   : > { %4447 = vmatmul.mubr.msk.f32.vlgmr.msra.gmra.mrb[4].mxu1 %vm1056_vm1, %v1761_v19 }
 0x894   : > { %4456 = vmatprep.mubr.msk.f32.mxu1 %vm5417_vm0, %v5416_v0 }
 0x895   : > { %v1928_v25 = vpop.permute.xlu0 %1927 }
 0x896   : > { %4455 = vmatpush3.msra.mxu1 %v1928_v25  ;;  %v2258_v28 = vpop.permute.xlu1 %2257 }
 0x897   : > { %4457 = vmatmul.mubr.msk.f32.vlgmr.msra.gmra.mrb[6].mxu1 %vm1056_vm1, %v1926_v23  ;;  %4464 = vmatprep.subr.mxu1 %v5416_v0  ;;  %v4202_v23 = vld [vmem:[#allocation11] ss:$0 sm:$0xff] }
 0x898   : > { %v4976_v26 = vpop.eup %4975  ;;  %4465 = vmatpush3.msra.mxu1 %v2093_v24  ;;  %4466 = vmatprep.mubr.msk.f32.mxu1 %vm5417_vm0, %v5416_v0 }
 0x899   : > { %v2091_v27 = vmul.f32 %v4976_v26, %v4968_v11  ;;  %4474 = vmatprep.subr.mxu1 %v5416_v0 }
 0x89b   : > { %4467 = vmatmul.mubr.msk.f32.vlgmr.msra.gmra.mrb[8].mxu1 %vm1056_vm1, %v2091_v27 }
 0x89c   : > { %v4978_v29 = vpop.eup %4977  ;;  %4475 = vmatpush3.msra.mxu1 %v2258_v28  ;;  %4476 = vmatprep.mubr.msk.f32.mxu1 %vm5417_vm0, %v5416_v0 }
 0x89d   : > { %v2256_v30 = vmul.f32 %v4978_v29, %v4970_v13  ;;  %4688 = vmatprep.subr.bf16.mxu1 %v5418_v6  ;;  %v4203_v29 = vld [vmem:[#allocation13] ss:$0 sm:$0xff] }
 0x89f   : > { %4477 = vmatmul.mubr.msk.f32.vlgmr.msra.gmra.mrb[10].mxu1 %vm1056_vm1, %v2256_v30 }
 0x8a0   : > { %4498 = vmatprep.mubr.msk.f32.mxu1 %vm5417_vm0, %v5416_v0 }
 0x966   : > { %v1834_v37 = vpop.f32.mrb[4].mxu1 }
 0x967   : > { %v4448_v39 = vpop.f32.mrb[5].mxu1 }
 0x96a   : > { %v1999_v40 = vpop.f32.mrb[6].mxu1 }
 0x96b   : > { %2334 = vrot.lane.b32.xlu1 %v1999_v40, %s6239_s15  ;;  %v4458_v41 = vpop.f32.mrb[7].mxu1  ;;  %s6303_s15 = sld [smem:[#allocation40_spill]] }
 0x96e   : > { %v2164_v42 = vpop.f32.mrb[8].mxu1 }
 0x96f   : > { %2338 = vrot.lane.b32.xlu0 %v2164_v42, %s6242_s7  ;;  %v4468_v43 = vpop.f32.mrb[9].mxu1  ;;  %s6307_s7 = smov 80  }
 0x971   : > { %s6304_s26 = smov %s6303_s15  ;;  %v2463_v1 = vld [vmem:[%s6303_s15] sm:$0xff]  ;;  %s6306_s15 = smov 104  }
 0x972   : > { %v2329_v44 = vpop.f32.mrb[10].mxu1  ;;  %v2464_v2 = vld [vmem:[%s6304_s26 + $0x8] sm:$0xff]  ;;  %v2466_v4 = vld [vmem:[%s6304_s26 + $0x18] sm:$0xff] }
 0x973   : > { %2342 = vrot.lane.b32.xlu1 %v2329_v44, %s6241_s19  ;;  %v4478_v45 = vpop.f32.mrb[11].mxu1  ;;  %s6305_s19 = sld [smem:[#allocation41_spill]]  ;;  %v4689_v3 = vpack.c.bf16 %v2464_v2, %v2463_v1 }
 0x975   : > { %4690 = vmatpush3.bf16.msra.mxu1 %v4689_v3 }
 0x976   : > { %4691 = vmatprep.subr.bf16.mxu1 %v5418_v6 }
 0x979   : > { %v2548_v7 = vld [vmem:[%s6305_s19] sm:$0xff]  ;;  %v2549_v8 = vld [vmem:[%s6305_s19 + $0x8] sm:$0xff]  ;;  %v2550_v9 = vld [vmem:[%s6305_s19 + $0x10] sm:$0xff] }
 0x97a   : > { %v4695_v10 = vpack.c.bf16 %v2549_v8, %v2548_v7  ;;  %v2551_v11 = vld [vmem:[%s6305_s19 + $0x18] sm:$0xff]  ;;  %v2552_v13 = vld [vmem:[%s6305_s19 + $0x20] sm:$0xff]  ;;  %v2553_v14 = vld [vmem:[%s6305_s19 + $0x28] sm:$0xff] }
 0x97b   : > { %v4698_v12 = vpack.c.bf16 %v2551_v11, %v2550_v9  ;;  %v4701_v15 = vpack.c.bf16 %v2553_v14, %v2552_v13  ;;  %v2554_v26 = vld [vmem:[%s6305_s19 + $0x30] sm:$0xff]  ;;  %v2555_v27 = vld [vmem:[%s6305_s19 + $0x38] sm:$0xff] }
 0x97c   : > { %v4704_v28 = vpack.c.bf16 %v2555_v27, %v2554_v26 }
 0x9dd   : > { %v2335_v46 = vpop.permute.xlu1 %2334 }
 0x9de   : > { %v2345_v48 = vsel %vm1056_vm1, %v1834_v37, %v2335_v46  ;;  %v4209_v46 = vld [vmem:[%s6299_s22 + $0x20] sm:$0xff] }
 0x9e1   : > { %v2339_v47 = vpop.permute.xlu0 %2338 }
 0x9e2   : > { %v2346_v50 = vsel %vm1225_vm3, %v2345_v48, %v2339_v47  ;;  %v4210_v47 = vld [vmem:[%s6299_s22 + $0x28] sm:$0xff] }
 0x9e3   : > { %v4707_v48 = vpack.c.bf16 %v4210_v47, %v4209_v46 }
 0x9e5   : > { %v2343_v51 = vpop.permute.xlu1 %2342 }
 0x9e6   : > { %v2348_v52 = vsel %vm2347_vm8, %v2346_v50, %v2343_v51  ;;  %v4211_v50 = vld [vmem:[%s6299_s22 + $0x30] sm:$0xff]  ;;  %v4212_v51 = vld [vmem:[%s6299_s22 + $0x38] sm:$0xff] }
 0x9e7   : > { %4488 = vmatmul.mubr.msk.f32.vlgmr.msra.gmra.mrb[18].mxu0 %vm1142_vm2, %v2348_v52  ;;  %v4710_v52 = vpack.c.bf16 %v4212_v51, %v4211_v50 }
 0x9e8   : > { %4517 = vmatprep.mubr.msk.f32.mxu0 %vm5417_vm0, %v5416_v0  ;;  %4696 = vmatpush3.bf16.msra.mxu0 %v4695_v10 }
 0x9e9   : > { %4697 = vmatprep.subr.bf16.mxu0 %v5418_v6 }
 0x9ec   : > { %4699 = vmatpush3.bf16.msra.mxu0 %v4698_v12 }
 0x9ed   : > { %4700 = vmatprep.subr.bf16.mxu0 %v5418_v6 }
 0x9f0   : > { %4702 = vmatpush3.bf16.msra.mxu0 %v4701_v15 }
 0x9f1   : > { %4703 = vmatprep.subr.bf16.mxu0 %v5418_v6 }
 0x9f4   : > { %4705 = vmatpush3.bf16.msra.mxu0 %v4704_v28 }
 0x9f5   : > { %4541 = vmatprep.subr.mxu0 %v5416_v0 }
 0xaba   : > { %v2429_v54 = vpop.f32.mrb[18].mxu0 }
 0xabb   : > { %v2430_v55 = vadd.f32 %v4199_v53, %v2429_v54  ;;  %v4489_v56 = vpop.f32.mrb[19].mxu0 }
 0xabd   : > { %v2433_v57 = vadd.f32 %v2430_v55, %v5885_v22  ;;  %v2465_v22 = vld [vmem:[%s6304_s26 + $0x10] sm:$0xff] }
 0xabe   : > { %v4692_v5 = vpack.c.bf16 %v2466_v4, %v2465_v22 }
 0xabf   : > { %v2436_v58 = vsel %vm1142_vm2, %v2433_v57, 0.0 }
 0xac0   : > { %2437 = vadd.xlane.f32.xlu0 %v2436_v58  ;;  %4693 = vmatpush3.bf16.msra.mxu1 %v4692_v5 }
 0xac1   : > { %4706 = vmatprep.subr.bf16.mxu1 %v5418_v6 }
 0xb4d   : > { %v2438_v59 = vpop.xlane.xlu0 %2437 }
 0xb4e   : > { %v2439_v60 = vmul.f32 0.03125, %v2438_v59  ;;  %v4208_v59 = vld [vmem:[#allocation17] ss:$0 sm:$0xff] }
 0xb50   : > { %v2440_v61 = vsub.f32 %v2433_v57, %v2439_v60  ;;  %v4207_v57 = vld [vmem:[#allocation16] ss:$0 sm:$0xff] }
 0xb52   : > { %v2441_v62 = vmul.f32 %v2440_v61, %v2440_v61 }
 0xb54   : > { %v2442_v63 = vsel %vm1142_vm2, %v2441_v62, 0.0  ;;  %v4214_v62 = vld [vmem:[%s6300_s1 + $0x1] ss:$0 sm:$0xff]  ;;  %s6308_s1 = smov 72  }
 0xb55   : > { %2443 = vadd.xlane.f32.xlu1 %v2442_v63 }
 0xbe2   : > { %v2444_v16 = vpop.xlane.xlu1 %2443 }
 0xbe3   : > { %v2445_v17 = vmul.f32 0.03125, %v2444_v16 }
 0xbe5   : > { %v2446_v18 = vadd.f32 1e-05, %v2445_v17 }
 0xbe7   : > { %4979 = vrsqrt.f32 %v2446_v18 }
 0xbf1   : > { %v4980_v19 = vpop.eup %4979 }
 0xbf2   : > { %v2448_v21 = vmul.f32 %v4980_v19, %v2440_v61 }
 0xbf4   : > { %v2455_v24 = vmul.f32 %v4201_v20, %v2448_v21 }
 0xbf6   : > { %v2462_v25 = vadd.f32 %v4202_v23, %v2455_v24 }
 0xbf8   : > { %4499 = vmatmul.mubr.msk.f32.vlgmr.msra.gmra.mrb[12].mxu1 %vm1142_vm2, %v2462_v25 }
 0xbf9   : > { %4528 = vmatprep.mubr.msk.f32.mxu1 %vm5417_vm0, %v5416_v0  ;;  %4708 = vmatpush3.bf16.msra.mxu1 %v4707_v48 }
 0xbfa   : > { %4709 = vmatprep.subr.bf16.mxu1 %v5418_v6 }
 0xbfd   : > { %4711 = vmatpush3.bf16.msra.mxu1 %v4710_v52 }
 0xbfe   : > { %4531 = vmatprep.subr.mxu1 %v5416_v0 }
 0xccb   : > { %v2543_v30 = vpop.f32.mrb[12].mxu1 }
 0xccc   : > { %v2544_v31 = vadd.f32 %v4203_v29, %v2543_v30  ;;  %v4500_v32 = vpop.f32.mrb[13].mxu1 }
 0xcce   : > { %v2547_v33 = vmax.f32 %v2544_v31, 0.0 }
 0xcd0   : > { %4518 = vmatmul.mubr.msk.f32.vlgmr.msra.gmra.mrb[20].mxu0 %vm2563_vm9, %v2547_v33 }
 0xcd1   : > { %4543 = vmatprep.mubr.msk.f32.mxu0 %vm5417_vm0, %v5416_v0 }
 0xda3   : > { %v2633_v35 = vpop.f32.mrb[20].mxu0 }
 0xda4   : > { %v2634_v36 = vadd.f32 %v4205_v34, %v2633_v35  ;;  %v4519_v37 = vpop.f32.mrb[21].mxu0 }
 0xda6   : > { %v2637_v39 = vadd.f32 %v2634_v36, %v2462_v25 }
 0xda8   : > { %v2640_v40 = vsel %vm1142_vm2, %v2637_v39, 0.0 }
 0xda9   : > { %2641 = vadd.xlane.f32.xlu0 %v2640_v40 }
 0xe36   : > { %v2642_v41 = vpop.xlane.xlu0 %2641 }
 0xe37   : > { %v2643_v42 = vmul.f32 0.03125, %v2642_v41 }
 0xe39   : > { %v2644_v43 = vsub.f32 %v2637_v39, %v2643_v42 }
 0xe3b   : > { %v2645_v44 = vmul.f32 %v2644_v43, %v2644_v43 }
 0xe3d   : > { %v2646_v45 = vsel %vm1142_vm2, %v2645_v44, 0.0 }
 0xe3e   : > { %2647 = vadd.xlane.f32.xlu0 %v2646_v45 }
 0xecb   : > { %v2648_v53 = vpop.xlane.xlu0 %2647 }
 0xecc   : > { %v2649_v54 = vmul.f32 0.03125, %v2648_v53 }
 0xece   : > { %v2650_v55 = vadd.f32 1e-05, %v2649_v54 }
 0xed0   : > { %4981 = vrsqrt.f32 %v2650_v55 }
 0xeda   : > { %v4982_v56 = vpop.eup %4981 }
 0xedb   : > { %v2652_v58 = vmul.f32 %v4982_v56, %v2644_v43 }
 0xedd   : > { %v2659_v60 = vmul.f32 %v4207_v57, %v2652_v58 }
 0xedf   : > { %v6017_v61 = vadd.f32 %v4208_v59, %v2659_v60 }
 0xee1   : > { %4529 = vmatmul.mubr.msk.f32.vlgmr.msra.gmra.mrb[14].mxu1 %vm1142_vm2, %v6017_v61 }
 0xee2   : > { %4533 = vmatprep.mubr.msk.f32.mxu1 %vm5417_vm0, %v5416_v0 }
 0xfb4   : > { %v2749_v63 = vpop.f32.mrb[14].mxu1 }
 0xfb5   : > { %v6024_v1 = vadd.f32 %v4214_v62, %v2749_v63  ;;  %v4530_v2 = vpop.f32.mrb[15].mxu1 }
 0xfb7   : > { %2921 = vrot.lane.b32.xlu1 %v6024_v1, %s5420_s11  ;;  %2755 = vrot.lane.b32.xlu0 %v6024_v1, %s5421_s2  ;;  %v2753_v3 = vmul.f32 0.35355338, %v6024_v1  ;;  %s6310_s11 = smov 48   ;;  %s6311_s2 = smov 40  }
 0xfbb   : > { %3084 = vrot.lane.b32.xlu0 %v2753_v3, %s5422_s16  ;;  %2919 = vrot.lane.b32.xlu1 %v2753_v3, %s5423_s18  ;;  %s6312_s16 = smov 56   ;;  %s6313_s18 = smov 8  }
 0xfbf   : > { %3249 = vrot.lane.b32.xlu0 %v2753_v3, %s6306_s15  ;;  %3086 = vrot.lane.b32.xlu1 %v6024_v1, %s6307_s7  ;;  %s6314_s7 = smov 16   ;;  %s6315_s15 = smov 24  }
 0xfc3   : > { %3251 = vrot.lane.b32.xlu1 %v6024_v1, %s6308_s1  ;;  %s6309_s1 = smov 64  }
0x1029   : > { %v2922_v22 = vpop.permute.xlu1 %2921  ;;  %v2756_v4 = vpop.permute.xlu0 %2755 }
0x102a   : > { %4532 = vmatpush3.xpose.msk.msra.mxu1 %vm1056_vm1, %v2756_v4  ;;  %4542 = vmatpush3.xpose.msk.msra.mxu0 %vm1056_vm1, %v2922_v22  ;;  %v4229_v22 = vld [vmem:[%s6302_s23 + $0x28] sm:$0xff] }
0x102b   : > { %4551 = vmatprep.subr.mxu0 %v5416_v0  ;;  %4536 = vmatprep.subr.mxu1 %v5416_v0 }
0x102d   : > { %v2920_v5 = vpop.permute.xlu1 %2919  ;;  %4534 = vmatmul.mubr.msk.f32.vlgmr.msra.gmra.mrb[16].mxu1 %vm1056_vm1, %v2753_v3  ;;  %v3085_v8 = vpop.permute.xlu0 %3084  ;;  %v4228_v3 = vld [vmem:[%s6302_s23 + $0x20] sm:$0xff] }
0x102e   : > { %4544 = vmatmul.mubr.msk.f32.vlgmr.msra.gmra.mrb[22].mxu0 %vm1056_vm1, %v2920_v5  ;;  %4538 = vmatprep.mubr.msk.f32.mxu1 %vm5417_vm0, %v5416_v0  ;;  %v4713_v4 = vpack.c.bf16 %v4229_v22, %v4228_v3  ;;  %v4230_v5 = vld [vmem:[%s6302_s23 + $0x30] sm:$0xff] }
0x102f   : > { %4553 = vmatprep.mubr.msk.f32.mxu0 %vm5417_vm0, %v5416_v0 }
0x1031   : > { %v3087_v7 = vpop.permute.xlu1 %3086  ;;  %v3250_v10 = vpop.permute.xlu0 %3249 }
0x1032   : > { %4552 = vmatpush3.xpose.msk.msra.mxu0 %vm1056_vm1, %v3087_v7  ;;  %v4231_v7 = vld [vmem:[%s6302_s23 + $0x38] sm:$0xff] }
0x1033   : > { %4561 = vmatprep.subr.mxu0 %v5416_v0 }
0x1035   : > { %4554 = vmatmul.mubr.msk.f32.vlgmr.msra.gmra.mrb[24].mxu0 %vm1056_vm1, %v3085_v8  ;;  %v3252_v9 = vpop.permute.xlu1 %3251  ;;  %v4716_v8 = vpack.c.bf16 %v4231_v7, %v4230_v5 }
0x1036   : > { %4562 = vmatpush3.xpose.msk.msra.mxu0 %vm1056_vm1, %v3252_v9  ;;  %4563 = vmatprep.mubr.msk.f32.mxu0 %vm5417_vm0, %v5416_v0 }
0x1037   : > { %4712 = vmatprep.subr.bf16.mxu0 %v5418_v6 }
0x1039   : > { %4564 = vmatmul.mubr.msk.f32.vlgmr.msra.gmra.mrb[26].mxu0 %vm1056_vm1, %v3250_v10 }
0x103a   : > { %4579 = vmatprep.mubr.msk.f32.mxu0 %vm5417_vm0, %v5416_v0  ;;  %4714 = vmatpush3.bf16.msra.mxu0 %v4713_v4  ;;  %v4250_v4 = vld [vmem:[#allocation14 + $0x1] ss:$0 sm:$0xff] }
0x103b   : > { %4715 = vmatprep.subr.bf16.mxu0 %v5418_v6 }
0x103e   : > { %4717 = vmatpush3.bf16.msra.mxu0 %v4716_v8 }
0x103f   : > { %4724 = vmatprep.subr.bf16.mxu0 %v5418_v6 }
0x1100   : > { %v2828_v11 = vpop.f32.mrb[16].mxu1 }
0x1101   : > { %v2829_v12 = vadd.f32 %v2828_v11, %v5929_v38  ;;  %v4535_v13 = vpop.f32.mrb[17].mxu1  ;;  %v2993_v14 = vpop.f32.mrb[22].mxu0 }
0x1102   : > { %v2994_v15 = vadd.f32 %v2993_v14, %v5929_v38  ;;  %v4545_v16 = vpop.f32.mrb[23].mxu0 }
0x1103   : > { %v2832_v17 = vsel %vm1056_vm1, %v2829_v12, -inf }
0x1104   : > { %2833 = vmax.xlane.f32.xlu1 %v2832_v17  ;;  %v2997_v18 = vsel %vm1056_vm1, %v2994_v15, -inf }
0x1105   : > { %2998 = vmax.xlane.f32.xlu0 %v2997_v18 }
0x1108   : > { %v3158_v19 = vpop.f32.mrb[24].mxu0 }
0x1109   : > { %v3159_v20 = vadd.f32 %v3158_v19, %v5929_v38  ;;  %v4555_v21 = vpop.f32.mrb[25].mxu0 }
0x110b   : > { %v3162_v23 = vsel %vm1056_vm1, %v3159_v20, -inf }
0x110c   : > { %3163 = vmax.xlane.f32.xlu0 %v3162_v23  ;;  %v3323_v24 = vpop.f32.mrb[26].mxu0 }
0x110d   : > { %v3324_v25 = vadd.f32 %v3323_v24, %v5929_v38  ;;  %v4565_v26 = vpop.f32.mrb[27].mxu0  ;;  %v4232_v24 = vld [vmem:[#allocation8 + $0x1] ss:$0 sm:$0xff] }
0x110f   : > { %v3327_v27 = vsel %vm1056_vm1, %v3324_v25, -inf }
0x1110   : > { %3328 = vmax.xlane.f32.xlu0 %v3327_v27 }
0x1115   : > { %2843 = vrot.lane.b32.xlu1 %v6024_v1, %s6309_s1  ;;  %s6316_s1 = sld [smem:[#allocation34_spill]] }
0x1191   : > { %v2834_v28 = vpop.xlane.xlu1 %2833 }
0x1192   : > { %v2835_v29 = vsub.f32 %v2829_v12, %v2834_v28  ;;  %v2999_v30 = vpop.xlane.xlu0 %2998 }
0x1193   : > { %v3000_v31 = vsub.f32 %v2994_v15, %v2999_v30 }
0x1194   : > { %v2836_v32 = vmul.f32 1.442695, %v2835_v29 }
0x1195   : > { %v3001_v33 = vmul.f32 1.442695, %v3000_v31  ;;  %v2844_v34 = vpop.permute.xlu1 %2843 }
0x1196   : > { %4983 = vpow2.f32 %v2836_v32  ;;  %4537 = vmatpush3.msra.mxu1 %v2844_v34 }
0x1197   : > { %4985 = vpow2.f32 %v3001_v33  ;;  %4546 = vmatprep.subr.mxu1 %v5416_v0 }
0x1199   : > { %v3164_v38 = vpop.xlane.xlu0 %3163 }
0x119a   : > { %v3165_v35 = vsub.f32 %v3159_v20, %v3164_v38  ;;  %v4236_v38 = vld [vmem:[%s6304_s26 + $0x20] sm:$0xff] }
0x119c   : > { %v3166_v36 = vmul.f32 1.442695, %v3165_v35  ;;  %v4237_v35 = vld [vmem:[%s6304_s26 + $0x28] sm:$0xff] }
0x119d   : > { %v3329_v37 = vpop.xlane.xlu0 %3328 }
0x119e   : > { %4987 = vpow2.f32 %v3166_v36  ;;  %v3330_v39 = vsub.f32 %v3324_v25, %v3329_v37  ;;  %v4719_v36 = vpack.c.bf16 %v4237_v35, %v4236_v38  ;;  %v4239_v37 = vld [vmem:[%s6304_s26 + $0x38] sm:$0xff] }
0x11a0   : > { %v4984_v40 = vpop.eup %4983  ;;  %v3331_v41 = vmul.f32 1.442695, %v3330_v39 }
0x11a1   : > { %v4986_v42 = vpop.eup %4985  ;;  %v2838_v43 = vsel %vm1056_vm1, %v4984_v40, 0.0 }
0x11a2   : > { %4989 = vpow2.f32 %v3331_v41  ;;  %2839 = vadd.xlane.f32.xlu1 %v2838_v43  ;;  %v3003_v44 = vsel %vm1056_vm1, %v4986_v42, 0.0  ;;  %v4243_v41 = vld [vmem:[%s6305_s19 + $0x48] sm:$0xff] }
0x11a3   : > { %3004 = vadd.xlane.f32.xlu0 %v3003_v44  ;;  %v4245_v44 = vld [vmem:[%s6305_s19 + $0x58] sm:$0xff] }
0x11a8   : > { %v4988_v45 = vpop.eup %4987 }
0x11a9   : > { %v3168_v46 = vsel %vm1056_vm1, %v4988_v45, 0.0 }
0x11aa   : > { %3169 = vadd.xlane.f32.xlu1 %v3168_v46  ;;  %v4246_v46 = vld [vmem:[%s6305_s19 + $0x60] sm:$0xff] }
0x11ac   : > { %v4990_v47 = vpop.eup %4989 }
0x11ad   : > { %v3333_v48 = vsel %vm1056_vm1, %v4990_v47, 0.0 }
0x11ae   : > { %3334 = vadd.xlane.f32.xlu0 %v3333_v48 }
0x11bb   : > { %3173 = vrot.lane.b32.xlu1 %v6024_v1, %s6310_s11  ;;  %s6317_s11 = sld [smem:[#allocation33_spill]] }
0x11bf   : > { %3338 = vrot.lane.b32.xlu1 %v6024_v1, %s6311_s2 }
0x11c1   : > { %s6318_s2 = smov %s6317_s11 }
0x11c2   : > { %v3856_v49 = vld [vmem:[%s6318_s2 + $0x30] sm:$0xff] }
0x11c4   : > { %3008 = vrot.lane.b32.xlu0 %v6024_v1, %s6312_s16  ;;  %s1042_s16 = sand.u32 1, %s5365_s10  }
0x122f   : > { %v2840_v50 = vpop.xlane.xlu1 %2839 }
0x1230   : > { %4991 = vrcp.f32 %v2840_v50  ;;  %v3005_v51 = vpop.xlane.xlu0 %3004 }
0x1231   : > { %4993 = vrcp.f32 %v3005_v51 }
0x1237   : > { %v3170_v52 = vpop.xlane.xlu1 %3169 }
0x1238   : > { %4995 = vrcp.f32 %v3170_v52 }
0x123a   : > { %v4992_v53 = vpop.eup %4991 }
0x123b   : > { %v2842_v54 = vmul.f32 %v4992_v53, %v4984_v40  ;;  %v3335_v55 = vpop.xlane.xlu0 %3334  ;;  %v4994_v56 = vpop.eup %4993  ;;  %v4242_v40 = vld [vmem:[%s6305_s19 + $0x40] sm:$0xff] }
0x123c   : > { %4997 = vrcp.f32 %v3335_v55  ;;  %v3007_v57 = vmul.f32 %v4994_v56, %v4986_v42  ;;  %v3174_v58 = vpop.permute.xlu1 %3173  ;;  %v4244_v42 = vld [vmem:[%s6305_s19 + $0x50] sm:$0xff]  ;;  %v4725_v43 = vpack.c.bf16 %v4243_v41, %v4242_v40  ;;  %v4235_v56 = vld [vmem:[#allocation11 + $0x1] ss:$0 sm:$0xff]  ;;  %v3853_v40 = vld [vmem:[%s6318_s2 + $0x18] sm:$0xff] }
0x123d   : > { %4539 = vmatmul.mubr.msk.f32.vlgmr.msra.gmra.mrb[18].mxu1 %vm1056_vm1, %v2842_v54  ;;  %v4234_v54 = vld [vmem:[#allocation10 + $0x1] ss:$0 sm:$0xff]  ;;  %v3854_v41 = vld [vmem:[%s6318_s2 + $0x20] sm:$0xff] }
0x123e   : > { %4548 = vmatprep.mubr.msk.f32.mxu1 %vm5417_vm0, %v5416_v0 }
0x123f   : > { %v3009_v59 = vpop.permute.xlu0 %3008 }
0x1240   : > { %4547 = vmatpush3.msra.mxu1 %v3009_v59  ;;  %v3339_v63 = vpop.permute.xlu1 %3338  ;;  %v4248_v59 = vld [vmem:[%s6305_s19 + $0x70] sm:$0xff] }
0x1241   : > { %4549 = vmatmul.mubr.msk.f32.vlgmr.msra.gmra.mrb[20].mxu1 %vm1056_vm1, %v3007_v57  ;;  %4556 = vmatprep.subr.mxu1 %v5416_v0 }
0x1242   : > { %v4996_v60 = vpop.eup %4995  ;;  %4557 = vmatpush3.msra.mxu1 %v3174_v58  ;;  %4558 = vmatprep.mubr.msk.f32.mxu1 %vm5417_vm0, %v5416_v0 }
0x1243   : > { %v3172_v62 = vmul.f32 %v4996_v60, %v4988_v45  ;;  %4566 = vmatprep.subr.mxu1 %v5416_v0  ;;  %v4728_v45 = vpack.c.bf16 %v4245_v44, %v4244_v42  ;;  %v4249_v60 = vld [vmem:[%s6305_s19 + $0x78] sm:$0xff]  ;;  %v3855_v42 = vld [vmem:[%s6318_s2 + $0x28] sm:$0xff] }
0x1244   : > { %v3857_v44 = vld [vmem:[%s6318_s2 + $0x38] sm:$0xff] }
0x1245   : > { %4559 = vmatmul.mubr.msk.f32.vlgmr.msra.gmra.mrb[22].mxu1 %vm1056_vm1, %v3172_v62  ;;  %v4734_v62 = vpack.c.bf16 %v4249_v60, %v4248_v59  ;;  %v3864_v60 = vld [vmem:[%s6318_s2 + $0x70] sm:$0xff] }
0x1246   : > { %v4998_v1 = vpop.eup %4997  ;;  %4567 = vmatpush3.msra.mxu1 %v3339_v63  ;;  %4568 = vmatprep.mubr.msk.f32.mxu1 %vm5417_vm0, %v5416_v0  ;;  %v4240_v63 = vld [vmem:[#allocation13 + $0x1] ss:$0 sm:$0xff] }
0x1247   : > { %v3337_v2 = vmul.f32 %v4998_v1, %v4990_v47  ;;  %4718 = vmatprep.subr.bf16.mxu1 %v5418_v6  ;;  %v4247_v47 = vld [vmem:[%s6305_s19 + $0x68] sm:$0xff] }
0x1248   : > { %v4731_v48 = vpack.c.bf16 %v4247_v47, %v4246_v46  ;;  %v3858_v46 = vld [vmem:[%s6318_s2 + $0x40] sm:$0xff]  ;;  %v3859_v47 = vld [vmem:[%s6318_s2 + $0x48] sm:$0xff] }
0x1249   : > { %4569 = vmatmul.mubr.msk.f32.vlgmr.msra.gmra.mrb[24].mxu1 %vm1056_vm1, %v3337_v2 }
0x124a   : > { %4590 = vmatprep.mubr.msk.f32.mxu1 %vm5417_vm0, %v5416_v0  ;;  %4720 = vmatpush3.bf16.msra.mxu1 %v4719_v36  ;;  %v3850_v36 = vld [vmem:[%s6317_s11] sm:$0xff] }
0x124b   : > { %4721 = vmatprep.subr.bf16.mxu1 %v5418_v6 }
0x1310   : > { %v2915_v9 = vpop.f32.mrb[18].mxu1 }
0x1311   : > { %v4540_v10 = vpop.f32.mrb[19].mxu1 }
0x1314   : > { %v3080_v11 = vpop.f32.mrb[20].mxu1 }
0x1315   : > { %3415 = vrot.lane.b32.xlu1 %v3080_v11, %s6313_s18  ;;  %v4550_v12 = vpop.f32.mrb[21].mxu1  ;;  %s4170_s18 = sshll.u32 %s1042_s16, 3 }
0x1318   : > { %v3245_v13 = vpop.f32.mrb[22].mxu1 }
0x1319   : > { %3419 = vrot.lane.b32.xlu0 %v3245_v13, %s6314_s7  ;;  %v4560_v14 = vpop.f32.mrb[23].mxu1  ;;  %s4257_s7 = sshll.u32 %s5611_s0, 7  ;;  %s5434_s0 = smov [#allocation19]  }
0x131c   : > { %v3410_v15 = vpop.f32.mrb[24].mxu1 }
0x131d   : > { %3423 = vrot.lane.b32.xlu1 %v3410_v15, %s6315_s15  ;;  %v4570_v16 = vpop.f32.mrb[25].mxu1  ;;  %s1044_s15 = scalar_lea.vmem [#allocation19], %s4170_s18  ;;  %s5291_s18 = sshll.u32 %s5434_s0, 4  ;;  %s5292_s18 = int_to_ptr.vmem [resolvable:$false] %s5291_s18 }
0x131e   : > { %v3756_v16 = vld [vmem:[%s6316_s1] sm:$0xff]  ;;  %s3951_s11 = sshll.u32 %s1044_s15, 4  ;;  %s6174_s11 = int_to_ptr.vmem [resolvable:$true] %s3951_s11 }
0x131f   : > { %s5287_s3 = scalar_lea.vmem %s6174_s11, 128  ;;  %p5294_p3 = scmp.lt.s32.totalorder %s6174_s11, %s5292_s18 }
0x1320   : > { %p5288_p13 = scmp.ne.s32.totalorder %s6174_s11, %s5287_s3 }
0x1322   : > { %p5289_p0 = pnand %p5288_p13, %p6319_p1 }
0x1324   : > { %p5290_p2 = pneg %p5289_p0 }
0x1387   : > { %v3416_v17 = vpop.permute.xlu1 %3415 }
0x1388   : > { %v3426_v19 = vsel %vm1056_vm1, %v2915_v9, %v3416_v17  ;;  %v3757_v17 = vld [vmem:[%s6316_s1 + $0x8] sm:$0xff] }
0x138b   : > { %v3420_v18 = vpop.permute.xlu0 %3419 }
0x138c   : > { %v3427_v20 = vsel %vm1225_vm3, %v3426_v19, %v3420_v18  ;;  %v4737_v18 = vpack.c.bf16 %v3757_v17, %v3756_v16  ;;  %v3758_v19 = vld [vmem:[%s6316_s1 + $0x10] sm:$0xff] }
0x138f   : > { %v3424_v21 = vpop.permute.xlu1 %3423 }
0x1390   : > { %v3428_v23 = vsel %vm2347_vm8, %v3427_v20, %v3424_v21  ;;  %v3759_v20 = vld [vmem:[%s6316_s1 + $0x18] sm:$0xff]  ;;  %s6172_s1 = scalar_lea.hbm %s5588_s25, %s4257_s7  ;;  %s5293_s7 = scalar_lea.vmem %s5292_s18, 256 }
0x1391   : > { %4580 = vmatmul.mubr.msk.f32.vlgmr.msra.gmra.mrb[28].mxu0 %vm1142_vm2, %v3428_v23  ;;  %v4740_v21 = vpack.c.bf16 %v3759_v20, %v3758_v19  ;;  %p5295_p4 = scmp.lt.s32.totalorder %s5293_s7, %s5287_s3 }
0x1392   : > { %4609 = vmatprep.mubr.msk.f32.mxu0 %vm5417_vm0, %v5416_v0  ;;  %4726 = vmatpush3.bf16.msra.mxu0 %v4725_v43  ;;  %v4749_v43 = vpack.c.bf16 %v3855_v42, %v3854_v41 }
0x1393   : > { %4727 = vmatprep.subr.bf16.mxu0 %v5418_v6  ;;  %p5296_p12 = por %p5295_p4, %p5294_p3 }
0x1395   : > { %p5297_p5 = pnand %p5296_p12, %p5290_p2 }
0x1396   : > { %4729 = vmatpush3.bf16.msra.mxu0 %v4728_v45  ;;  %v4752_v45 = vpack.c.bf16 %v3857_v44, %v3856_v49 }
0x1397   : > { %4730 = vmatprep.subr.bf16.mxu0 %v5418_v6 }
0x139a   : > { %4732 = vmatpush3.bf16.msra.mxu0 %v4731_v48  ;;  %v4755_v48 = vpack.c.bf16 %v3859_v47, %v3858_v46 }
0x139b   : > { %4733 = vmatprep.subr.bf16.mxu0 %v5418_v6 }
0x139e   : > { %4735 = vmatpush3.bf16.msra.mxu0 %v4734_v62  ;;  %v3865_v62 = vld [vmem:[%s6318_s2 + $0x78] sm:$0xff] }
0x1464   : > { %v3511_v25 = vpop.f32.mrb[28].mxu0 }
0x1465   : > { %v3512_v26 = vadd.f32 %v4232_v24, %v3511_v25  ;;  %v4581_v27 = vpop.f32.mrb[29].mxu0 }
0x1466   : > { %v4252_v27 = vld [vmem:[#allocation16 + $0x1] ss:$0 sm:$0xff] }
0x1467   : > { %v3515_v28 = vadd.f32 %v3512_v26, %v6017_v61  ;;  %v4238_v61 = vld [vmem:[%s6304_s26 + $0x30] sm:$0xff] }
0x1468   : > { %v4722_v39 = vpack.c.bf16 %v4239_v37, %v4238_v61  ;;  %v3851_v61 = vld [vmem:[%s6318_s2 + $0x8] sm:$0xff]  ;;  %v3852_v37 = vld [vmem:[%s6318_s2 + $0x10] sm:$0xff] }
0x1469   : > { %v3520_v29 = vsel %vm1142_vm2, %v3515_v28, 0.0 }
0x146a   : > { %3521 = vadd.xlane.f32.xlu0 %v3520_v29  ;;  %4723 = vmatpush3.bf16.msra.mxu1 %v4722_v39  ;;  %v4253_v29 = vld [vmem:[#allocation17 + $0x1] ss:$0 sm:$0xff]  ;;  %v4743_v39 = vpack.c.bf16 %v3851_v61, %v3850_v36 }
0x146b   : > { %4736 = vmatprep.subr.bf16.mxu1 %v5418_v6 }
0x14f7   : > { %v3522_v30 = vpop.xlane.xlu0 %3521 }
0x14f8   : > { %v3523_v31 = vmul.f32 0.03125, %v3522_v30 }
0x14fa   : > { %v3524_v32 = vsub.f32 %v3515_v28, %v3523_v31 }
0x14fc   : > { %v3525_v33 = vmul.f32 %v3524_v32, %v3524_v32 }
0x14fe   : > { %v3526_v34 = vsel %vm1142_vm2, %v3525_v33, 0.0 }
0x14ff   : > { %3527 = vadd.xlane.f32.xlu1 %v3526_v34 }
0x158c   : > { %v3528_v50 = vpop.xlane.xlu1 %3527 }
0x158d   : > { %v3529_v51 = vmul.f32 0.03125, %v3528_v50 }
0x158f   : > { %v3530_v52 = vadd.f32 1e-05, %v3529_v51 }
0x1591   : > { %4999 = vrsqrt.f32 %v3530_v52 }
0x159b   : > { %v5000_v53 = vpop.eup %4999 }
0x159c   : > { %v3532_v55 = vmul.f32 %v5000_v53, %v3524_v32  ;;  %v4254_v32 = vld [vmem:[#allocation7] ss:$0 sm:$0xff] }
0x159e   : > { %v3539_v57 = vmul.f32 %v4234_v54, %v3532_v55  ;;  %v3860_v54 = vld [vmem:[%s6318_s2 + $0x50] sm:$0xff]  ;;  %v3861_v55 = vld [vmem:[%s6318_s2 + $0x58] sm:$0xff] }
0x15a0   : > { %v3546_v58 = vadd.f32 %v4235_v56, %v3539_v57  ;;  %v3862_v56 = vld [vmem:[%s6318_s2 + $0x60] sm:$0xff]  ;;  %v4758_v57 = vpack.c.bf16 %v3861_v55, %v3860_v54 }
0x15a2   : > { %4591 = vmatmul.mubr.msk.f32.vlgmr.msra.gmra.mrb[26].mxu1 %vm1142_vm2, %v3546_v58 }
0x15a3   : > { %4620 = vmatprep.mubr.msk.f32.mxu1 %vm5417_vm0, %v5416_v0  ;;  %4738 = vmatpush3.bf16.msra.mxu1 %v4737_v18 }
0x15a4   : > { %4739 = vmatprep.subr.bf16.mxu1 %v5418_v6 }
0x15a7   : > { %4741 = vmatpush3.bf16.msra.mxu1 %v4740_v21 }
0x15a8   : > { %4742 = vmatprep.subr.bf16.mxu1 %v5418_v6 }
0x1675   : > { %v3629_v1 = vpop.f32.mrb[26].mxu1 }
0x1676   : > { %v3630_v2 = vadd.f32 %v4240_v63, %v3629_v1  ;;  %v4592_v3 = vpop.f32.mrb[27].mxu1  ;;  %v4764_v63 = vpack.c.bf16 %v3865_v62, %v3864_v60 }
0x1678   : > { %v3633_v22 = vmax.f32 %v3630_v2, 0.0 }
0x167a   : > { %4610 = vmatmul.mubr.msk.f32.vlgmr.msra.gmra.mrb[30].mxu0 %vm2563_vm9, %v3633_v22 }
0x174d   : > { %v3720_v5 = vpop.f32.mrb[30].mxu0 }
0x174e   : > { %v3721_v7 = vadd.f32 %v4250_v4, %v3720_v5  ;;  %v4611_v8 = vpop.f32.mrb[31].mxu0 }
0x1750   : > { %v3724_v9 = vadd.f32 %v3721_v7, %v3546_v58  ;;  %v3863_v58 = vld [vmem:[%s6318_s2 + $0x68] sm:$0xff]  ;;  %s3938_s2 = scalar_lea.sflag [#allocation4], %s1042_s16 }
0x1751   : > { %v4761_v59 = vpack.c.bf16 %v3863_v58, %v3862_v56 }
0x1752   : > { %v3729_v10 = vsel %vm1142_vm2, %v3724_v9, 0.0 }
0x1753   : > { %3730 = vadd.xlane.f32.xlu0 %v3729_v10 }
0x17e0   : > { %v3731_v11 = vpop.xlane.xlu0 %3730 }
0x17e1   : > { %v3732_v12 = vmul.f32 0.03125, %v3731_v11 }
0x17e3   : > { %v3733_v13 = vsub.f32 %v3724_v9, %v3732_v12 }
0x17e5   : > { %v3734_v14 = vmul.f32 %v3733_v13, %v3733_v13 }
0x17e7   : > { %v3735_v15 = vsel %vm1142_vm2, %v3734_v14, 0.0 }
0x17e8   : > { %3736 = vadd.xlane.f32.xlu0 %v3735_v15 }
0x1875   : > { %v3737_v23 = vpop.xlane.xlu0 %3736 }
0x1876   : > { %v3738_v24 = vmul.f32 0.03125, %v3737_v23 }
0x1878   : > { %v3739_v25 = vadd.f32 1e-05, %v3738_v24 }
0x187a   : > { %5001 = vrsqrt.f32 %v3739_v25 }
0x1884   : > { %v5002_v26 = vpop.eup %5001 }
0x1885   : > { %v3741_v28 = vmul.f32 %v5002_v26, %v3733_v13 }
0x1887   : > { %v3748_v30 = vmul.f32 %v4252_v27, %v3741_v28 }
0x1889   : > { %v3755_v31 = vadd.f32 %v4253_v29, %v3748_v30 }
0x188b   : > { %4621 = vmatmul.mubr.msk.f32.vlgmr.msra.gmra.mrb[28].mxu1 %vm1142_vm2, %v3755_v31 }
0x188c   : > { %4655 = vmatprep.mubr.msk.f32.mxu1 %vm5417_vm0, %v5416_v0  ;;  %4744 = vmatpush3.bf16.msra.mxu1 %v4743_v39  ;;  %v4746_v0 = vpack.c.bf16 %v3853_v40, %v3852_v37 }
0x188d   : > { %4745 = vmatprep.subr.bf16.mxu1 %v5418_v6 }
0x1890   : > { %4747 = vmatpush3.bf16.msra.mxu1 %v4746_v0 }
0x1891   : > { %4748 = vmatprep.subr.bf16.mxu1 %v5418_v6 }
0x1894   : > { %4750 = vmatpush3.bf16.msra.mxu1 %v4749_v43 }
0x1895   : > { %4751 = vmatprep.subr.bf16.mxu1 %v5418_v6 }
0x1898   : > { %4753 = vmatpush3.bf16.msra.mxu1 %v4752_v45 }
0x1899   : > { %4754 = vmatprep.subr.bf16.mxu1 %v5418_v6 }
0x189c   : > { %4756 = vmatpush3.bf16.msra.mxu1 %v4755_v48 }
0x189d   : > { %4757 = vmatprep.subr.bf16.mxu1 %v5418_v6 }
0x18a0   : > { %4759 = vmatpush3.bf16.msra.mxu1 %v4758_v57 }
0x18a1   : > { %4760 = vmatprep.subr.bf16.mxu1 %v5418_v6 }
0x18a4   : > { %4762 = vmatpush3.bf16.msra.mxu1 %v4761_v59 }
0x18a5   : > { %4763 = vmatprep.subr.bf16.mxu1 %v5418_v6 }
0x18a8   : > { %4765 = vmatpush3.bf16.msra.mxu1 %v4764_v63 }
0x195e   : > { %v3836_v33 = vpop.f32.mrb[28].mxu1 }
0x195f   : > { %v3837_v34 = vadd.f32 %v4254_v32, %v3836_v33  ;;  %v4622_v38 = vpop.f32.mrb[29].mxu1 }
0x1961   : > { %v3840_v35 = vsel %vm1495_vm4, %v3837_v34, -1e+30 }
0x1962   : > { %3841 = vmax.xlane.f32.xlu0 %v3840_v35 }
0x19ef   : > { %v3842_v50 = vpop.xlane.xlu0 %3841 }
0x19f0   : > { %v3843_v51 = vsub.f32 %v3840_v35, %v3842_v50 }
0x19f2   : > { %v3844_v52 = vmul.f32 1.442695, %v3843_v51 }
0x19f4   : > { %5003 = vpow2.f32 %v3844_v52 }
0x19fe   : > { %v5004_v53 = vpop.eup %5003 }
0x19ff   : > { %3846 = vadd.xlane.f32.xlu1 %v5004_v53 }
0x1a8c   : > { %v3847_v1 = vpop.xlane.xlu1 %3846 }
0x1a8d   : > { %5005 = vrcp.f32 %v3847_v1 }
0x1a97   : > { %v5006_v2 = vpop.eup %5005 }
0x1a98   : > { %v3849_v3 = vmul.f32 %v5006_v2, %v5004_v53 }
0x1a9a   : > { %4656 = vmatmul.mubr.f32.vlgmr.msra.gmra.mrb[30].mxu1 %v3849_v3 }
0x1b6d   : > { %v3932_v6 = vpop.f32.mrb[30].mxu1 }
0x1b6e   : > { %3936 = vst.msk [vmem:[%s1044_s15] sm:$0xff] %vm1225_vm3, %v3932_v6  ;;  %v4657_v22 = vpop.f32.mrb[31].mxu1 }
0x1b6f   : > { %5300 = shalt.err (!%p5297_p5)
}
0x1b70   : > { %s5301_s16 = scalar_lea.hbm %s6172_s1, 128  ;;  %s5305_s15 = scalar_lea.hbm %s5588_s25, 256 }
0x1b71   : > { %p5302_p6 = scmp.ne.s32.totalorder %s6172_s1, %s5301_s16  ;;  %p5306_p7 = scmp.lt.u32.totalorder %s6172_s1, %s5588_s25 }
0x1b72   : > { %p5307_p8 = scmp.lt.u32.totalorder %s5305_s15, %s5301_s16  ;;  %p5309_p13 = scmp.lt.u32.totalorder %s5301_s16, %s6172_s1 }
0x1b73   : > { %p5303_p9 = pnand %p5302_p6, %p6319_p1 }
0x1b74   : > { %p5308_p11 = por %p5307_p8, %p5306_p7 }
0x1b75   : > { %p5304_p10 = pneg %p5303_p9 }
0x1b76   : > { %p5310_p0 = por %p5309_p13, %p5308_p11 }
0x1b78   : > { %p5311_p2 = pnand %p5310_p0, %p5304_p10 }
0x1b7a   : > { %5314 = shalt.err (!%p5311_p2)
}
0x1b7b   : > { %4806 = dma.vmem_to_hbm [thread:$0]  (%p6319_p1), %s6174_s11, 128, %s6172_s1, %s3938_s2  }
0x1b7c PF: > { %s6320_s3 = sld [smem:[#allocation45_spill]]  ;;  %s6321_s0 = sld [smem:[#allocation43_spill]] }
0x1b7d   : > { %s6322_s18 = sld [smem:[#allocation48_spill]] }
0x1b82   : > { %p4863_p3 = scmp.ge.s32.totalorder %s6320_s3, 2  ;;  %s3963_s7 = sand.u32 1, %s6321_s0  }
0x1b83   : > { %p6323_p4 = scmp.ne.s32.totalorder %s6322_s18, 0  ;;  %s3964_s4 = scalar_lea.sflag [#allocation4], %s3963_s7 }
0x1b85   : > { %p4840_p12 = pnand %p4863_p3, %p6323_p4 }
0x1b87   : > { %5356 = dma.done.wait (!%p4840_p12), %s3964_s4, 128  }
0x1b88   : > { %5358 = vsyncadd (!%p4840_p12), %s3964_s4, 4294967168  ;;  %s6324_s15 = sld [smem:[#allocation46_spill]]  ;;  %s6325_s16 = sld [smem:[#allocation44_spill]] }
0x1b89   : > { %s6326_s11 = sld [smem:[#allocation47_spill]]  ;;  %s6327_s7 = smov %s5365_s10 }
0x1b8e   : > { %p75_p5 = scmp.ge.s32.totalorder %s6324_s15, 4   ;;  %s6328_s10 = smov %s6325_s16 }
0x1b90   :  { %77 = sbr.rel (!%p75_p5) target bundleno = 58 (0x3a), region = 256 }
0x1b97   :  { %3969 = vsyncpa [#allocation3], 1 }
0x1b98   :  { %3971 = vsyncpa [#allocation3 + $0x1], 1 }
0x1b99   :  { %3972 = vsyncpa [#allocation6], 1 }
0x1b9a   :  { %3973 = vsyncpa [#allocation9], 1 }
0x1b9b   :  { %3974 = vsyncpa [#allocation12], 1 }
0x1b9c   :  { %3975 = vsyncpa [#allocation15], 1 }
0x1b9d   :  { %3976 = vsyncpa [#allocation18], 1 }
0x1b9e   :  { %3977 = vsyncpa [#allocation4], 1 }
0x1b9f   :  { %3979 = vsyncpa [#allocation4 + $0x1], 1 }

</bundles_post_ra>
